<compile_context>
chip_gen: v7x
topology: tpu7x:2x2x1
jax: 0.10.0
libtpu: 0.0.40
codegen_flags: <defaults>
</compile_context>

<pallas_src>
import functools

import jax
import jax.numpy as jnp
import numpy as np
from jax import lax
from jax.experimental import pallas as pl
from jax.experimental.pallas import tpu as pltpu

MAX_1 = 4.0
THETA = MAX_1 - 0.001        # threshold used by catCuda.getSpikes
_CHUNK = 256                 # pixel-rows processed per in-kernel step (bounds live vregs)


def _new_spike_kernel(x_ref, o_ref, *, theta, n_t, chunk):
    """x_ref / o_ref: (bm, T) blocks of the natural contiguous (pixel, time) layout."""
    inv_t = 1.0 / float(n_t)                 # T = 16 -> exact power-of-two scale (== /T)
    n_chunks = x_ref.shape[0] // chunk

    def body(c, carry):
        off = pl.multiple_of(c * chunk, chunk)
        xc = x_ref[pl.ds(off, chunk), :]                   # (chunk, T) contiguous rows
        xt = jnp.transpose(xc)                             # (T, chunk): time -> sublanes (XLU)
        # torch.sum(x, dim=4) / T   (multiply by 1/16 is exact and avoids a divide)
        v = jnp.sum(xt, axis=0, keepdims=True) * inv_t     # (1, chunk), lane-dense
        # catCuda.getSpikes: IF neuron with soft reset, fed the same v at all T steps
        # (torch.stack of T copies).  Same op order as the reference loop.
        pot = jnp.zeros_like(v)
        rows = []
        for _ in range(n_t):                               # T small & static -> unroll
            pot = pot + v
            s = (pot >= theta).astype(v.dtype)             # binary spike {0., 1.}
            pot = pot - theta * s                          # soft reset
            rows.append(s)
        # (T, chunk) spike tile: with chunk=256 this is ~32 vregs -> no spilling.
        sp = jnp.concatenate(rows, axis=0)
        o_ref[pl.ds(off, chunk), :] = jnp.transpose(sp)    # back to (chunk, T) and store
        return carry

    lax.fori_loop(0, n_chunks, body, 0, unroll=2)


def _pick_block_and_vmem(m, chunk):
    """Per-generation block sizing: large blocks for HBM efficiency, bounded by VMEM."""
    try:
        vmem_cap = int(pltpu.get_tpu_info().vmem_capacity_bytes)
    except Exception:                       # conservative (v7x-sized) fallback
        vmem_cap = 64 << 20
    # A (bm, 16) f32 block is lane-padded to 128 in VMEM -> 512 B per pixel-row.
    # in + out, double-buffered  =>  ~2 KiB of VMEM per pixel-row of block.
    budget = min(vmem_cap // 3, 40 << 20)   # v5e/v6e: ~40 MiB, v7x: ~21 MiB
    bm = min(budget // 2048, 32768)
    m_rounded = pl.cdiv(m, chunk) * chunk
    bm = max(chunk, (min(bm, m_rounded) // chunk) * chunk)
    vmem_limit = min(vmem_cap * 7 // 8, bm * 2048 + (16 << 20))
    return bm, int(vmem_limit)


def new_spike(x, theta=THETA):
    """x: (N, C, H, W, T) float32 -> spikes of the same shape (float32)."""
    N, C, H, W, T = x.shape
    M = N * C * H * W

    # Natural contiguous view: a free reshape, no HBM transpose and no pad.
    x2 = x.reshape(M, T).astype(jnp.float32)

    bm, vmem_limit = _pick_block_and_vmem(M, _CHUNK)
    grid = (pl.cdiv(M, bm),)                # ragged edge handled by Pallas block masking

    out = pl.pallas_call(
        functools.partial(_new_spike_kernel, theta=theta, n_t=T, chunk=_CHUNK),
        out_shape=jax.ShapeDtypeStruct((M, T), jnp.float32),
        grid=grid,
        in_specs=[pl.BlockSpec((bm, T), lambda i: (i, 0))],
        out_specs=pl.BlockSpec((bm, T), lambda i: (i, 0)),
        compiler_params=pltpu.CompilerParams(
            dimension_semantics=("parallel",),
            vmem_limit_bytes=vmem_limit,
        ),
    )(x2)

    return out.reshape(N, C, H, W, T)


def _reference_new_spike(x, theta=THETA):
    """Pure NumPy reference mirroring NewSpike.forward (IF neuron with soft reset)."""
    x = np.asarray(x, dtype=np.float32)
    T = x.shape[-1]
    th = np.float32(theta)
    v = (x.sum(axis=-1) / np.float32(T)).astype(np.float32)   # (N,C,H,W)
    pot = np.zeros_like(v)
    spikes = np.zeros(x.shape, dtype=np.float32)
    for t in range(T):
        pot = pot + v
        s = (pot >= th).astype(np.float32)
        pot = pot - th * s
        spikes[..., t] = s
    return spikes


if __name__ == "__main__":
    key = jax.random.PRNGKey(0)
    # small shapes consistent with the module: (N, C, H, W, T) with T = 16
    N, C, H, W, T = 2, 4, 8, 8, 16
    u = jax.random.uniform(key, (N, C, H, W, T), dtype=jnp.float32,
                           minval=0.0, maxval=MAX_1)
    # Quantize to multiples of 1/256 so the time-sum is exact in f32 and the
    # kernel/reference comparison is independent of reduction order.
    x = jnp.round(u * 256.0) / 256.0

    out = jax.block_until_ready(new_spike(x))

    ref = _reference_new_spike(np.asarray(x))
    assert out.shape == x.shape and out.dtype == jnp.float32
    np.testing.assert_array_equal(np.asarray(out), ref)

    print("KERNEL_OK")
</pallas_src>

<mosaic_0001>
module attributes {stable_mosaic.version = 11 : i64} {
  func.func @_new_spike_kernel(%arg0: i32, %arg1: memref<512x16xf32, #tpu.memory_space<vmem>>, %arg2: memref<512x16xf32, #tpu.memory_space<vmem>>) attributes {dimension_semantics = [#tpu.dimension_semantics<parallel>], iteration_bounds = array<i64: 1>, scalar_prefetch = 0 : i64, scratch_operands = 0 : i64, tpu.core_type = #tpu.core_type<tc>, window_params = [{transform_indices = @transform_0, window_bounds = array<i64: 512, 16>}, {transform_indices = @transform_1, window_bounds = array<i64: 512, 16>}]} {
    %c0_i32 = arith.constant 0 : i32
    %c256_i32 = arith.constant 256 : i32
    %0 = arith.muli %c0_i32, %c256_i32 : i32
    %1 = tpu.assume_multiple %0, 256 : i32
    %2 = arith.index_cast %1 : i32 to index
    %c0 = arith.constant 0 : index
    %3 = vector.load %arg1[%2, %c0] : memref<512x16xf32, #tpu.memory_space<vmem>>, vector<256x16xf32>
    %4 = tpu.transpose %3, [1, 0] : vector<256x16xf32> -> vector<16x256xf32>
    %cst = arith.constant dense<0.000000e+00> : vector<256xf32>
    %5 = vector.multi_reduction <add>, %4, %cst [0] : vector<16x256xf32> to vector<256xf32>
    %6 = vector.shape_cast %5 : vector<256xf32> to vector<1x256xf32>
    %cst_0 = arith.constant 6.250000e-02 : f32
    %7 = vector.broadcast %cst_0 : f32 to vector<1x256xf32>
    %8 = arith.mulf %6, %7 : vector<1x256xf32>
    %cst_1 = arith.constant 0.000000e+00 : f32
    %9 = vector.broadcast %cst_1 : f32 to vector<1x256xf32>
    %10 = arith.addf %9, %8 : vector<1x256xf32>
    %cst_2 = arith.constant 3.999000e+00 : f32
    %11 = vector.broadcast %cst_2 : f32 to vector<1x256xf32>
    %12 = arith.cmpf oge, %10, %11 : vector<1x256xf32>
    %13 = arith.extui %12 : vector<1x256xi1> to vector<1x256xi32>
    %14 = arith.sitofp %13 : vector<1x256xi32> to vector<1x256xf32>
    %cst_3 = arith.constant 3.999000e+00 : f32
    %15 = vector.broadcast %cst_3 : f32 to vector<1x256xf32>
    %16 = arith.mulf %15, %14 : vector<1x256xf32>
    %17 = arith.subf %10, %16 : vector<1x256xf32>
    %18 = arith.addf %17, %8 : vector<1x256xf32>
    %cst_4 = arith.constant 3.999000e+00 : f32
    %19 = vector.broadcast %cst_4 : f32 to vector<1x256xf32>
    %20 = arith.cmpf oge, %18, %19 : vector<1x256xf32>
    %21 = arith.extui %20 : vector<1x256xi1> to vector<1x256xi32>
    %22 = arith.sitofp %21 : vector<1x256xi32> to vector<1x256xf32>
    %cst_5 = arith.constant 3.999000e+00 : f32
    %23 = vector.broadcast %cst_5 : f32 to vector<1x256xf32>
    %24 = arith.mulf %23, %22 : vector<1x256xf32>
    %25 = arith.subf %18, %24 : vector<1x256xf32>
    %26 = arith.addf %25, %8 : vector<1x256xf32>
    %cst_6 = arith.constant 3.999000e+00 : f32
    %27 = vector.broadcast %cst_6 : f32 to vector<1x256xf32>
    %28 = arith.cmpf oge, %26, %27 : vector<1x256xf32>
    %29 = arith.extui %28 : vector<1x256xi1> to vector<1x256xi32>
    %30 = arith.sitofp %29 : vector<1x256xi32> to vector<1x256xf32>
    %cst_7 = arith.constant 3.999000e+00 : f32
    %31 = vector.broadcast %cst_7 : f32 to vector<1x256xf32>
    %32 = arith.mulf %31, %30 : vector<1x256xf32>
    %33 = arith.subf %26, %32 : vector<1x256xf32>
    %34 = arith.addf %33, %8 : vector<1x256xf32>
    %cst_8 = arith.constant 3.999000e+00 : f32
    %35 = vector.broadcast %cst_8 : f32 to vector<1x256xf32>
    %36 = arith.cmpf oge, %34, %35 : vector<1x256xf32>
    %37 = arith.extui %36 : vector<1x256xi1> to vector<1x256xi32>
    %38 = arith.sitofp %37 : vector<1x256xi32> to vector<1x256xf32>
    %cst_9 = arith.constant 3.999000e+00 : f32
    %39 = vector.broadcast %cst_9 : f32 to vector<1x256xf32>
    %40 = arith.mulf %39, %38 : vector<1x256xf32>
    %41 = arith.subf %34, %40 : vector<1x256xf32>
    %42 = arith.addf %41, %8 : vector<1x256xf32>
    %cst_10 = arith.constant 3.999000e+00 : f32
    %43 = vector.broadcast %cst_10 : f32 to vector<1x256xf32>
    %44 = arith.cmpf oge, %42, %43 : vector<1x256xf32>
    %45 = arith.extui %44 : vector<1x256xi1> to vector<1x256xi32>
    %46 = arith.sitofp %45 : vector<1x256xi32> to vector<1x256xf32>
    %cst_11 = arith.constant 3.999000e+00 : f32
    %47 = vector.broadcast %cst_11 : f32 to vector<1x256xf32>
    %48 = arith.mulf %47, %46 : vector<1x256xf32>
    %49 = arith.subf %42, %48 : vector<1x256xf32>
    %50 = arith.addf %49, %8 : vector<1x256xf32>
    %cst_12 = arith.constant 3.999000e+00 : f32
    %51 = vector.broadcast %cst_12 : f32 to vector<1x256xf32>
    %52 = arith.cmpf oge, %50, %51 : vector<1x256xf32>
    %53 = arith.extui %52 : vector<1x256xi1> to vector<1x256xi32>
    %54 = arith.sitofp %53 : vector<1x256xi32> to vector<1x256xf32>
    %cst_13 = arith.constant 3.999000e+00 : f32
    %55 = vector.broadcast %cst_13 : f32 to vector<1x256xf32>
    %56 = arith.mulf %55, %54 : vector<1x256xf32>
    %57 = arith.subf %50, %56 : vector<1x256xf32>
    %58 = arith.addf %57, %8 : vector<1x256xf32>
    %cst_14 = arith.constant 3.999000e+00 : f32
    %59 = vector.broadcast %cst_14 : f32 to vector<1x256xf32>
    %60 = arith.cmpf oge, %58, %59 : vector<1x256xf32>
    %61 = arith.extui %60 : vector<1x256xi1> to vector<1x256xi32>
    %62 = arith.sitofp %61 : vector<1x256xi32> to vector<1x256xf32>
    %cst_15 = arith.constant 3.999000e+00 : f32
    %63 = vector.broadcast %cst_15 : f32 to vector<1x256xf32>
    %64 = arith.mulf %63, %62 : vector<1x256xf32>
    %65 = arith.subf %58, %64 : vector<1x256xf32>
    %66 = arith.addf %65, %8 : vector<1x256xf32>
    %cst_16 = arith.constant 3.999000e+00 : f32
    %67 = vector.broadcast %cst_16 : f32 to vector<1x256xf32>
    %68 = arith.cmpf oge, %66, %67 : vector<1x256xf32>
    %69 = arith.extui %68 : vector<1x256xi1> to vector<1x256xi32>
    %70 = arith.sitofp %69 : vector<1x256xi32> to vector<1x256xf32>
    %cst_17 = arith.constant 3.999000e+00 : f32
    %71 = vector.broadcast %cst_17 : f32 to vector<1x256xf32>
    %72 = arith.mulf %71, %70 : vector<1x256xf32>
    %73 = arith.subf %66, %72 : vector<1x256xf32>
    %74 = arith.addf %73, %8 : vector<1x256xf32>
    %cst_18 = arith.constant 3.999000e+00 : f32
    %75 = vector.broadcast %cst_18 : f32 to vector<1x256xf32>
    %76 = arith.cmpf oge, %74, %75 : vector<1x256xf32>
    %77 = arith.extui %76 : vector<1x256xi1> to vector<1x256xi32>
    %78 = arith.sitofp %77 : vector<1x256xi32> to vector<1x256xf32>
    %cst_19 = arith.constant 3.999000e+00 : f32
    %79 = vector.broadcast %cst_19 : f32 to vector<1x256xf32>
    %80 = arith.mulf %79, %78 : vector<1x256xf32>
    %81 = arith.subf %74, %80 : vector<1x256xf32>
    %82 = arith.addf %81, %8 : vector<1x256xf32>
    %cst_20 = arith.constant 3.999000e+00 : f32
    %83 = vector.broadcast %cst_20 : f32 to vector<1x256xf32>
    %84 = arith.cmpf oge, %82, %83 : vector<1x256xf32>
    %85 = arith.extui %84 : vector<1x256xi1> to vector<1x256xi32>
    %86 = arith.sitofp %85 : vector<1x256xi32> to vector<1x256xf32>
    %cst_21 = arith.constant 3.999000e+00 : f32
    %87 = vector.broadcast %cst_21 : f32 to vector<1x256xf32>
    %88 = arith.mulf %87, %86 : vector<1x256xf32>
    %89 = arith.subf %82, %88 : vector<1x256xf32>
    %90 = arith.addf %89, %8 : vector<1x256xf32>
    %cst_22 = arith.constant 3.999000e+00 : f32
    %91 = vector.broadcast %cst_22 : f32 to vector<1x256xf32>
    %92 = arith.cmpf oge, %90, %91 : vector<1x256xf32>
    %93 = arith.extui %92 : vector<1x256xi1> to vector<1x256xi32>
    %94 = arith.sitofp %93 : vector<1x256xi32> to vector<1x256xf32>
    %cst_23 = arith.constant 3.999000e+00 : f32
    %95 = vector.broadcast %cst_23 : f32 to vector<1x256xf32>
    %96 = arith.mulf %95, %94 : vector<1x256xf32>
    %97 = arith.subf %90, %96 : vector<1x256xf32>
    %98 = arith.addf %97, %8 : vector<1x256xf32>
    %cst_24 = arith.constant 3.999000e+00 : f32
    %99 = vector.broadcast %cst_24 : f32 to vector<1x256xf32>
    %100 = arith.cmpf oge, %98, %99 : vector<1x256xf32>
    %101 = arith.extui %100 : vector<1x256xi1> to vector<1x256xi32>
    %102 = arith.sitofp %101 : vector<1x256xi32> to vector<1x256xf32>
    %cst_25 = arith.constant 3.999000e+00 : f32
    %103 = vector.broadcast %cst_25 : f32 to vector<1x256xf32>
    %104 = arith.mulf %103, %102 : vector<1x256xf32>
    %105 = arith.subf %98, %104 : vector<1x256xf32>
    %106 = arith.addf %105, %8 : vector<1x256xf32>
    %cst_26 = arith.constant 3.999000e+00 : f32
    %107 = vector.broadcast %cst_26 : f32 to vector<1x256xf32>
    %108 = arith.cmpf oge, %106, %107 : vector<1x256xf32>
    %109 = arith.extui %108 : vector<1x256xi1> to vector<1x256xi32>
    %110 = arith.sitofp %109 : vector<1x256xi32> to vector<1x256xf32>
    %cst_27 = arith.constant 3.999000e+00 : f32
    %111 = vector.broadcast %cst_27 : f32 to vector<1x256xf32>
    %112 = arith.mulf %111, %110 : vector<1x256xf32>
    %113 = arith.subf %106, %112 : vector<1x256xf32>
    %114 = arith.addf %113, %8 : vector<1x256xf32>
    %cst_28 = arith.constant 3.999000e+00 : f32
    %115 = vector.broadcast %cst_28 : f32 to vector<1x256xf32>
    %116 = arith.cmpf oge, %114, %115 : vector<1x256xf32>
    %117 = arith.extui %116 : vector<1x256xi1> to vector<1x256xi32>
    %118 = arith.sitofp %117 : vector<1x256xi32> to vector<1x256xf32>
    %cst_29 = arith.constant 3.999000e+00 : f32
    %119 = vector.broadcast %cst_29 : f32 to vector<1x256xf32>
    %120 = arith.mulf %119, %118 : vector<1x256xf32>
    %121 = arith.subf %114, %120 : vector<1x256xf32>
    %122 = arith.addf %121, %8 : vector<1x256xf32>
    %cst_30 = arith.constant 3.999000e+00 : f32
    %123 = vector.broadcast %cst_30 : f32 to vector<1x256xf32>
    %124 = arith.cmpf oge, %122, %123 : vector<1x256xf32>
    %125 = arith.extui %124 : vector<1x256xi1> to vector<1x256xi32>
    %126 = arith.sitofp %125 : vector<1x256xi32> to vector<1x256xf32>
    %cst_31 = arith.constant 3.999000e+00 : f32
    %127 = vector.broadcast %cst_31 : f32 to vector<1x256xf32>
    %128 = arith.mulf %127, %126 : vector<1x256xf32>
    %129 = arith.subf %122, %128 : vector<1x256xf32>
    %130 = arith.addf %129, %8 : vector<1x256xf32>
    %cst_32 = arith.constant 3.999000e+00 : f32
    %131 = vector.broadcast %cst_32 : f32 to vector<1x256xf32>
    %132 = arith.cmpf oge, %130, %131 : vector<1x256xf32>
    %133 = arith.extui %132 : vector<1x256xi1> to vector<1x256xi32>
    %134 = arith.sitofp %133 : vector<1x256xi32> to vector<1x256xf32>
    %135 = tpu.concatenate %14, %22, %30, %38, %46, %54, %62, %70, %78, %86, %94, %102, %110, %118, %126, %134 in 0 : vector<1x256xf32>, vector<1x256xf32>, vector<1x256xf32>, vector<1x256xf32>, vector<1x256xf32>, vector<1x256xf32>, vector<1x256xf32>, vector<1x256xf32>, vector<1x256xf32>, vector<1x256xf32>, vector<1x256xf32>, vector<1x256xf32>, vector<1x256xf32>, vector<1x256xf32>, vector<1x256xf32>, vector<1x256xf32> -> vector<16x256xf32>
    %136 = tpu.transpose %135, [1, 0] : vector<16x256xf32> -> vector<256x16xf32>
    %137 = arith.index_cast %1 : i32 to index
    %c0_33 = arith.constant 0 : index
    %138 = vector.load %arg2[%137, %c0_33] : memref<512x16xf32, #tpu.memory_space<vmem>>, vector<256x16xf32>
    tpu.vector_store %arg2[%137, %c0_33], %136 {strides = array<i32>} : memref<512x16xf32, #tpu.memory_space<vmem>>, vector<256x16xf32>,
    %c1_i32 = arith.constant 1 : i32
    %c256_i32_34 = arith.constant 256 : i32
    %139 = arith.muli %c1_i32, %c256_i32_34 : i32
    %140 = tpu.assume_multiple %139, 256 : i32
    %141 = arith.index_cast %140 : i32 to index
    %c0_35 = arith.constant 0 : index
    %142 = vector.load %arg1[%141, %c0_35] : memref<512x16xf32, #tpu.memory_space<vmem>>, vector<256x16xf32>
    %143 = tpu.transpose %142, [1, 0] : vector<256x16xf32> -> vector<16x256xf32>
    %cst_36 = arith.constant dense<0.000000e+00> : vector<256xf32>
    %144 = vector.multi_reduction <add>, %143, %cst_36 [0] : vector<16x256xf32> to vector<256xf32>
    %145 = vector.shape_cast %144 : vector<256xf32> to vector<1x256xf32>
    %cst_37 = arith.constant 6.250000e-02 : f32
    %146 = vector.broadcast %cst_37 : f32 to vector<1x256xf32>
    %147 = arith.mulf %145, %146 : vector<1x256xf32>
    %cst_38 = arith.constant 0.000000e+00 : f32
    %148 = vector.broadcast %cst_38 : f32 to vector<1x256xf32>
    %149 = arith.addf %148, %147 : vector<1x256xf32>
    %cst_39 = arith.constant 3.999000e+00 : f32
    %150 = vector.broadcast %cst_39 : f32 to vector<1x256xf32>
    %151 = arith.cmpf oge, %149, %150 : vector<1x256xf32>
    %152 = arith.extui %151 : vector<1x256xi1> to vector<1x256xi32>
    %153 = arith.sitofp %152 : vector<1x256xi32> to vector<1x256xf32>
    %cst_40 = arith.constant 3.999000e+00 : f32
    %154 = vector.broadcast %cst_40 : f32 to vector<1x256xf32>
    %155 = arith.mulf %154, %153 : vector<1x256xf32>
    %156 = arith.subf %149, %155 : vector<1x256xf32>
    %157 = arith.addf %156, %147 : vector<1x256xf32>
    %cst_41 = arith.constant 3.999000e+00 : f32
    %158 = vector.broadcast %cst_41 : f32 to vector<1x256xf32>
    %159 = arith.cmpf oge, %157, %158 : vector<1x256xf32>
    %160 = arith.extui %159 : vector<1x256xi1> to vector<1x256xi32>
    %161 = arith.sitofp %160 : vector<1x256xi32> to vector<1x256xf32>
    %cst_42 = arith.constant 3.999000e+00 : f32
    %162 = vector.broadcast %cst_42 : f32 to vector<1x256xf32>
    %163 = arith.mulf %162, %161 : vector<1x256xf32>
    %164 = arith.subf %157, %163 : vector<1x256xf32>
    %165 = arith.addf %164, %147 : vector<1x256xf32>
    %cst_43 = arith.constant 3.999000e+00 : f32
    %166 = vector.broadcast %cst_43 : f32 to vector<1x256xf32>
    %167 = arith.cmpf oge, %165, %166 : vector<1x256xf32>
    %168 = arith.extui %167 : vector<1x256xi1> to vector<1x256xi32>
    %169 = arith.sitofp %168 : vector<1x256xi32> to vector<1x256xf32>
    %cst_44 = arith.constant 3.999000e+00 : f32
    %170 = vector.broadcast %cst_44 : f32 to vector<1x256xf32>
    %171 = arith.mulf %170, %169 : vector<1x256xf32>
    %172 = arith.subf %165, %171 : vector<1x256xf32>
    %173 = arith.addf %172, %147 : vector<1x256xf32>
    %cst_45 = arith.constant 3.999000e+00 : f32
    %174 = vector.broadcast %cst_45 : f32 to vector<1x256xf32>
    %175 = arith.cmpf oge, %173, %174 : vector<1x256xf32>
    %176 = arith.extui %175 : vector<1x256xi1> to vector<1x256xi32>
    %177 = arith.sitofp %176 : vector<1x256xi32> to vector<1x256xf32>
    %cst_46 = arith.constant 3.999000e+00 : f32
    %178 = vector.broadcast %cst_46 : f32 to vector<1x256xf32>
    %179 = arith.mulf %178, %177 : vector<1x256xf32>
    %180 = arith.subf %173, %179 : vector<1x256xf32>
    %181 = arith.addf %180, %147 : vector<1x256xf32>
    %cst_47 = arith.constant 3.999000e+00 : f32
    %182 = vector.broadcast %cst_47 : f32 to vector<1x256xf32>
    %183 = arith.cmpf oge, %181, %182 : vector<1x256xf32>
    %184 = arith.extui %183 : vector<1x256xi1> to vector<1x256xi32>
    %185 = arith.sitofp %184 : vector<1x256xi32> to vector<1x256xf32>
    %cst_48 = arith.constant 3.999000e+00 : f32
    %186 = vector.broadcast %cst_48 : f32 to vector<1x256xf32>
    %187 = arith.mulf %186, %185 : vector<1x256xf32>
    %188 = arith.subf %181, %187 : vector<1x256xf32>
    %189 = arith.addf %188, %147 : vector<1x256xf32>
    %cst_49 = arith.constant 3.999000e+00 : f32
    %190 = vector.broadcast %cst_49 : f32 to vector<1x256xf32>
    %191 = arith.cmpf oge, %189, %190 : vector<1x256xf32>
    %192 = arith.extui %191 : vector<1x256xi1> to vector<1x256xi32>
    %193 = arith.sitofp %192 : vector<1x256xi32> to vector<1x256xf32>
    %cst_50 = arith.constant 3.999000e+00 : f32
    %194 = vector.broadcast %cst_50 : f32 to vector<1x256xf32>
    %195 = arith.mulf %194, %193 : vector<1x256xf32>
    %196 = arith.subf %189, %195 : vector<1x256xf32>
    %197 = arith.addf %196, %147 : vector<1x256xf32>
    %cst_51 = arith.constant 3.999000e+00 : f32
    %198 = vector.broadcast %cst_51 : f32 to vector<1x256xf32>
    %199 = arith.cmpf oge, %197, %198 : vector<1x256xf32>
    %200 = arith.extui %199 : vector<1x256xi1> to vector<1x256xi32>
    %201 = arith.sitofp %200 : vector<1x256xi32> to vector<1x256xf32>
    %cst_52 = arith.constant 3.999000e+00 : f32
    %202 = vector.broadcast %cst_52 : f32 to vector<1x256xf32>
    %203 = arith.mulf %202, %201 : vector<1x256xf32>
    %204 = arith.subf %197, %203 : vector<1x256xf32>
    %205 = arith.addf %204, %147 : vector<1x256xf32>
    %cst_53 = arith.constant 3.999000e+00 : f32
    %206 = vector.broadcast %cst_53 : f32 to vector<1x256xf32>
    %207 = arith.cmpf oge, %205, %206 : vector<1x256xf32>
    %208 = arith.extui %207 : vector<1x256xi1> to vector<1x256xi32>
    %209 = arith.sitofp %208 : vector<1x256xi32> to vector<1x256xf32>
    %cst_54 = arith.constant 3.999000e+00 : f32
    %210 = vector.broadcast %cst_54 : f32 to vector<1x256xf32>
    %211 = arith.mulf %210, %209 : vector<1x256xf32>
    %212 = arith.subf %205, %211 : vector<1x256xf32>
    %213 = arith.addf %212, %147 : vector<1x256xf32>
    %cst_55 = arith.constant 3.999000e+00 : f32
    %214 = vector.broadcast %cst_55 : f32 to vector<1x256xf32>
    %215 = arith.cmpf oge, %213, %214 : vector<1x256xf32>
    %216 = arith.extui %215 : vector<1x256xi1> to vector<1x256xi32>
    %217 = arith.sitofp %216 : vector<1x256xi32> to vector<1x256xf32>
    %cst_56 = arith.constant 3.999000e+00 : f32
    %218 = vector.broadcast %cst_56 : f32 to vector<1x256xf32>
    %219 = arith.mulf %218, %217 : vector<1x256xf32>
    %220 = arith.subf %213, %219 : vector<1x256xf32>
    %221 = arith.addf %220, %147 : vector<1x256xf32>
    %cst_57 = arith.constant 3.999000e+00 : f32
    %222 = vector.broadcast %cst_57 : f32 to vector<1x256xf32>
    %223 = arith.cmpf oge, %221, %222 : vector<1x256xf32>
    %224 = arith.extui %223 : vector<1x256xi1> to vector<1x256xi32>
    %225 = arith.sitofp %224 : vector<1x256xi32> to vector<1x256xf32>
    %cst_58 = arith.constant 3.999000e+00 : f32
    %226 = vector.broadcast %cst_58 : f32 to vector<1x256xf32>
    %227 = arith.mulf %226, %225 : vector<1x256xf32>
    %228 = arith.subf %221, %227 : vector<1x256xf32>
    %229 = arith.addf %228, %147 : vector<1x256xf32>
    %cst_59 = arith.constant 3.999000e+00 : f32
    %230 = vector.broadcast %cst_59 : f32 to vector<1x256xf32>
    %231 = arith.cmpf oge, %229, %230 : vector<1x256xf32>
    %232 = arith.extui %231 : vector<1x256xi1> to vector<1x256xi32>
    %233 = arith.sitofp %232 : vector<1x256xi32> to vector<1x256xf32>
    %cst_60 = arith.constant 3.999000e+00 : f32
    %234 = vector.broadcast %cst_60 : f32 to vector<1x256xf32>
    %235 = arith.mulf %234, %233 : vector<1x256xf32>
    %236 = arith.subf %229, %235 : vector<1x256xf32>
    %237 = arith.addf %236, %147 : vector<1x256xf32>
    %cst_61 = arith.constant 3.999000e+00 : f32
    %238 = vector.broadcast %cst_61 : f32 to vector<1x256xf32>
    %239 = arith.cmpf oge, %237, %238 : vector<1x256xf32>
    %240 = arith.extui %239 : vector<1x256xi1> to vector<1x256xi32>
    %241 = arith.sitofp %240 : vector<1x256xi32> to vector<1x256xf32>
    %cst_62 = arith.constant 3.999000e+00 : f32
    %242 = vector.broadcast %cst_62 : f32 to vector<1x256xf32>
    %243 = arith.mulf %242, %241 : vector<1x256xf32>
    %244 = arith.subf %237, %243 : vector<1x256xf32>
    %245 = arith.addf %244, %147 : vector<1x256xf32>
    %cst_63 = arith.constant 3.999000e+00 : f32
    %246 = vector.broadcast %cst_63 : f32 to vector<1x256xf32>
    %247 = arith.cmpf oge, %245, %246 : vector<1x256xf32>
    %248 = arith.extui %247 : vector<1x256xi1> to vector<1x256xi32>
    %249 = arith.sitofp %248 : vector<1x256xi32> to vector<1x256xf32>
    %cst_64 = arith.constant 3.999000e+00 : f32
    %250 = vector.broadcast %cst_64 : f32 to vector<1x256xf32>
    %251 = arith.mulf %250, %249 : vector<1x256xf32>
    %252 = arith.subf %245, %251 : vector<1x256xf32>
    %253 = arith.addf %252, %147 : vector<1x256xf32>
    %cst_65 = arith.constant 3.999000e+00 : f32
    %254 = vector.broadcast %cst_65 : f32 to vector<1x256xf32>
    %255 = arith.cmpf oge, %253, %254 : vector<1x256xf32>
    %256 = arith.extui %255 : vector<1x256xi1> to vector<1x256xi32>
    %257 = arith.sitofp %256 : vector<1x256xi32> to vector<1x256xf32>
    %cst_66 = arith.constant 3.999000e+00 : f32
    %258 = vector.broadcast %cst_66 : f32 to vector<1x256xf32>
    %259 = arith.mulf %258, %257 : vector<1x256xf32>
    %260 = arith.subf %253, %259 : vector<1x256xf32>
    %261 = arith.addf %260, %147 : vector<1x256xf32>
    %cst_67 = arith.constant 3.999000e+00 : f32
    %262 = vector.broadcast %cst_67 : f32 to vector<1x256xf32>
    %263 = arith.cmpf oge, %261, %262 : vector<1x256xf32>
    %264 = arith.extui %263 : vector<1x256xi1> to vector<1x256xi32>
    %265 = arith.sitofp %264 : vector<1x256xi32> to vector<1x256xf32>
    %cst_68 = arith.constant 3.999000e+00 : f32
    %266 = vector.broadcast %cst_68 : f32 to vector<1x256xf32>
    %267 = arith.mulf %266, %265 : vector<1x256xf32>
    %268 = arith.subf %261, %267 : vector<1x256xf32>
    %269 = arith.addf %268, %147 : vector<1x256xf32>
    %cst_69 = arith.constant 3.999000e+00 : f32
    %270 = vector.broadcast %cst_69 : f32 to vector<1x256xf32>
    %271 = arith.cmpf oge, %269, %270 : vector<1x256xf32>
    %272 = arith.extui %271 : vector<1x256xi1> to vector<1x256xi32>
    %273 = arith.sitofp %272 : vector<1x256xi32> to vector<1x256xf32>
    %274 = tpu.concatenate %153, %161, %169, %177, %185, %193, %201, %209, %217, %225, %233, %241, %249, %257, %265, %273 in 0 : vector<1x256xf32>, vector<1x256xf32>, vector<1x256xf32>, vector<1x256xf32>, vector<1x256xf32>, vector<1x256xf32>, vector<1x256xf32>, vector<1x256xf32>, vector<1x256xf32>, vector<1x256xf32>, vector<1x256xf32>, vector<1x256xf32>, vector<1x256xf32>, vector<1x256xf32>, vector<1x256xf32>, vector<1x256xf32> -> vector<16x256xf32>
    %275 = tpu.transpose %274, [1, 0] : vector<16x256xf32> -> vector<256x16xf32>
    %276 = arith.index_cast %140 : i32 to index
    %c0_70 = arith.constant 0 : index
    %277 = vector.load %arg2[%276, %c0_70] : memref<512x16xf32, #tpu.memory_space<vmem>>, vector<256x16xf32>
    tpu.vector_store %arg2[%276, %c0_70], %275 {strides = array<i32>} : memref<512x16xf32, #tpu.memory_space<vmem>>, vector<256x16xf32>,
    %c2_i32 = arith.constant 2 : i32
    return
  }
  func.func @transform_0(%arg0: i32) -> (i32, i32) {
    %c0_i32 = arith.constant 0 : i32
    %c0_i32_0 = arith.constant 0 : i32
    return %arg0, %c0_i32 : i32, i32
  }
  func.func @transform_1(%arg0: i32) -> (i32, i32) {
    %c0_i32 = arith.constant 0 : i32
    %c0_i32_0 = arith.constant 0 : i32
    return %arg0, %c0_i32 : i32, i32
  }
}

</mosaic_0001>

<bundles_post_ra>
// kernel: tpu_custom_call.1
= control target key start
LH: loop header
LB: loop body
LE: loop exit
PB: predicated region body
PF: predicated region fallthrough
CT: control target
= control target key end

     0   :  { %vm308_vm10 = vcmask 1040384   ;;  %vm311_vm11 = vcmask 1041408   ;;  %vm314_vm14 = vcmask 1042432   ;;  %vm317_vm15 = vcmask 1043456   ;;  %s1902_s0 = inlined_call_operand.vmem [shape: f32[512,16], index: 0, kind: input, shape index: {}]   ;;  %s1903_s1 = inlined_call_operand.vmem [shape: f32[512,16], index: 1, kind: output, shape index: {}]  }
   0x1   :  { %v24_v0 = vld [vmem:[%s1902_s0 + $0x80] sm:$0xff]  ;;  %v25_v2 = vld [vmem:[%s1902_s0 + $0x88] sm:$0xff]  ;;  %v26_v4 = vld [vmem:[%s1902_s0 + $0x90] sm:$0xff] }
   0x2   :  { %v8_v1 = vld [vmem:[%s1902_s0] sm:$0xff]  ;;  %72 = vxpose.xlu1.b32.start [1/16] (narrow) %v24_v0, 16  ;;  %v9_v3 = vld [vmem:[%s1902_s0 + $0x8] sm:$0xff]  ;;  %v10_v5 = vld [vmem:[%s1902_s0 + $0x10] sm:$0xff] }
   0x3   :  { %40 = vxpose.xlu0.b32.start [1/16] (narrow) %v8_v1, 16  ;;  %v27_v6 = vld [vmem:[%s1902_s0 + $0x98] sm:$0xff]  ;;  %v28_v8 = vld [vmem:[%s1902_s0 + $0xa0] sm:$0xff]  ;;  %v29_v10 = vld [vmem:[%s1902_s0 + $0xa8] sm:$0xff] }
   0x4   :  { %v11_v7 = vld [vmem:[%s1902_s0 + $0x18] sm:$0xff]  ;;  %v12_v9 = vld [vmem:[%s1902_s0 + $0x20] sm:$0xff]  ;;  %v13_v11 = vld [vmem:[%s1902_s0 + $0x28] sm:$0xff] }
   0x5   :  { %v30_v12 = vld [vmem:[%s1902_s0 + $0xb0] sm:$0xff]  ;;  %v31_v14 = vld [vmem:[%s1902_s0 + $0xb8] sm:$0xff]  ;;  %v32_v16 = vld [vmem:[%s1902_s0 + $0xc0] sm:$0xff] }
   0x6   :  { %73 = vxpose.xlu1.b32.cont [2/16] (narrow) %v25_v2, 16  ;;  %v14_v13 = vld [vmem:[%s1902_s0 + $0x30] sm:$0xff]  ;;  %v15_v15 = vld [vmem:[%s1902_s0 + $0x38] sm:$0xff]  ;;  %v16_v17 = vld [vmem:[%s1902_s0 + $0x40] sm:$0xff] }
   0x7   :  { %41 = vxpose.xlu0.b32.cont [2/16] (narrow) %v9_v3, 16  ;;  %v33_v18 = vld [vmem:[%s1902_s0 + $0xc8] sm:$0xff]  ;;  %v34_v20 = vld [vmem:[%s1902_s0 + $0xd0] sm:$0xff]  ;;  %v35_v22 = vld [vmem:[%s1902_s0 + $0xd8] sm:$0xff] }
   0x8   :  { %v17_v19 = vld [vmem:[%s1902_s0 + $0x48] sm:$0xff]  ;;  %v18_v21 = vld [vmem:[%s1902_s0 + $0x50] sm:$0xff]  ;;  %v19_v23 = vld [vmem:[%s1902_s0 + $0x58] sm:$0xff] }
   0x9   :  { %v36_v24 = vld [vmem:[%s1902_s0 + $0xe0] sm:$0xff]  ;;  %v37_v26 = vld [vmem:[%s1902_s0 + $0xe8] sm:$0xff]  ;;  %v38_v28 = vld [vmem:[%s1902_s0 + $0xf0] sm:$0xff] }
   0xa   :  { %74 = vxpose.xlu1.b32.cont [3/16] (narrow) %v26_v4, 16  ;;  %v20_v25 = vld [vmem:[%s1902_s0 + $0x60] sm:$0xff]  ;;  %v21_v27 = vld [vmem:[%s1902_s0 + $0x68] sm:$0xff]  ;;  %v22_v29 = vld [vmem:[%s1902_s0 + $0x70] sm:$0xff] }
   0xb   :  { %42 = vxpose.xlu0.b32.cont [3/16] (narrow) %v10_v5, 16  ;;  %v39_v30 = vld [vmem:[%s1902_s0 + $0xf8] sm:$0xff]  ;;  %v918_v32 = vld [vmem:[%s1902_s0 + $0x180] sm:$0xff]  ;;  %v919_v34 = vld [vmem:[%s1902_s0 + $0x188] sm:$0xff] }
   0xc   :  { %v23_v31 = vld [vmem:[%s1902_s0 + $0x78] sm:$0xff]  ;;  %v902_v33 = vld [vmem:[%s1902_s0 + $0x100] sm:$0xff]  ;;  %v903_v35 = vld [vmem:[%s1902_s0 + $0x108] sm:$0xff] }
   0xd   :  { %v920_v36 = vld [vmem:[%s1902_s0 + $0x190] sm:$0xff]  ;;  %v921_v38 = vld [vmem:[%s1902_s0 + $0x198] sm:$0xff]  ;;  %v922_v40 = vld [vmem:[%s1902_s0 + $0x1a0] sm:$0xff] }
   0xe   :  { %75 = vxpose.xlu1.b32.cont [4/16] (narrow) %v27_v6, 16  ;;  %v904_v37 = vld [vmem:[%s1902_s0 + $0x110] sm:$0xff]  ;;  %v905_v39 = vld [vmem:[%s1902_s0 + $0x118] sm:$0xff]  ;;  %v906_v41 = vld [vmem:[%s1902_s0 + $0x120] sm:$0xff] }
   0xf   :  { %43 = vxpose.xlu0.b32.cont [4/16] (narrow) %v11_v7, 16  ;;  %v923_v42 = vld [vmem:[%s1902_s0 + $0x1a8] sm:$0xff]  ;;  %v924_v44 = vld [vmem:[%s1902_s0 + $0x1b0] sm:$0xff]  ;;  %v925_v46 = vld [vmem:[%s1902_s0 + $0x1b8] sm:$0xff] }
  0x10   :  { %v907_v43 = vld [vmem:[%s1902_s0 + $0x128] sm:$0xff]  ;;  %v908_v45 = vld [vmem:[%s1902_s0 + $0x130] sm:$0xff]  ;;  %v909_v47 = vld [vmem:[%s1902_s0 + $0x138] sm:$0xff] }
  0x11   :  { %v926_v48 = vld [vmem:[%s1902_s0 + $0x1c0] sm:$0xff]  ;;  %v927_v50 = vld [vmem:[%s1902_s0 + $0x1c8] sm:$0xff]  ;;  %v928_v52 = vld [vmem:[%s1902_s0 + $0x1d0] sm:$0xff] }
  0x12   :  { %76 = vxpose.xlu1.b32.cont [5/16] (narrow) %v28_v8, 16  ;;  %v910_v49 = vld [vmem:[%s1902_s0 + $0x140] sm:$0xff]  ;;  %v911_v51 = vld [vmem:[%s1902_s0 + $0x148] sm:$0xff]  ;;  %v912_v53 = vld [vmem:[%s1902_s0 + $0x150] sm:$0xff] }
  0x13   :  { %44 = vxpose.xlu0.b32.cont [5/16] (narrow) %v12_v9, 16  ;;  %v929_v54 = vld [vmem:[%s1902_s0 + $0x1d8] sm:$0xff]  ;;  %v930_v56 = vld [vmem:[%s1902_s0 + $0x1e0] sm:$0xff]  ;;  %v931_v58 = vld [vmem:[%s1902_s0 + $0x1e8] sm:$0xff] }
  0x14   :  { %v913_v55 = vld [vmem:[%s1902_s0 + $0x158] sm:$0xff]  ;;  %v914_v57 = vld [vmem:[%s1902_s0 + $0x160] sm:$0xff]  ;;  %v915_v59 = vld [vmem:[%s1902_s0 + $0x168] sm:$0xff] }
  0x15   :  { %v932_v60 = vld [vmem:[%s1902_s0 + $0x1f0] sm:$0xff]  ;;  %v933_v62 = vld [vmem:[%s1902_s0 + $0x1f8] sm:$0xff] }
  0x16   :  { %77 = vxpose.xlu1.b32.cont [6/16] (narrow) %v29_v10, 16  ;;  %v916_v61 = vld [vmem:[%s1902_s0 + $0x170] sm:$0xff]  ;;  %v917_v63 = vld [vmem:[%s1902_s0 + $0x178] sm:$0xff] }
  0x17   :  { %45 = vxpose.xlu0.b32.cont [6/16] (narrow) %v13_v11, 16 }
  0x1a   :  { %78 = vxpose.xlu1.b32.cont [7/16] (narrow) %v30_v12, 16 }
  0x1b   :  { %46 = vxpose.xlu0.b32.cont [7/16] (narrow) %v14_v13, 16 }
  0x1e   :  { %79 = vxpose.xlu1.b32.cont [8/16] (narrow) %v31_v14, 16 }
  0x1f   :  { %47 = vxpose.xlu0.b32.cont [8/16] (narrow) %v15_v15, 16 }
  0x22   :  { %80 = vxpose.xlu1.b32.cont [9/16] (narrow) %v32_v16, 16 }
  0x23   :  { %48 = vxpose.xlu0.b32.cont [9/16] (narrow) %v16_v17, 16 }
  0x26   :  { %81 = vxpose.xlu1.b32.cont [10/16] (narrow) %v33_v18, 16 }
  0x27   :  { %49 = vxpose.xlu0.b32.cont [10/16] (narrow) %v17_v19, 16 }
  0x2a   :  { %82 = vxpose.xlu1.b32.cont [11/16] (narrow) %v34_v20, 16  ;;  %v1167_v20 = vmov 0.0  }
  0x2b   :  { %50 = vxpose.xlu0.b32.cont [11/16] (narrow) %v18_v21, 16 }
  0x2e   :  { %83 = vxpose.xlu1.b32.cont [12/16] (narrow) %v35_v22, 16 }
  0x2f   :  { %51 = vxpose.xlu0.b32.cont [12/16] (narrow) %v19_v23, 16 }
  0x32   :  { %84 = vxpose.xlu1.b32.cont [13/16] (narrow) %v36_v24, 16 }
  0x33   :  { %52 = vxpose.xlu0.b32.cont [13/16] (narrow) %v20_v25, 16 }
  0x36   :  { %85 = vxpose.xlu1.b32.cont [14/16] (narrow) %v37_v26, 16 }
  0x37   :  { %53 = vxpose.xlu0.b32.cont [14/16] (narrow) %v21_v27, 16 }
  0x3a   :  { %86 = vxpose.xlu1.b32.cont [15/16] (narrow) %v38_v28, 16 }
  0x3b   :  { %54 = vxpose.xlu0.b32.cont [15/16] (narrow) %v22_v29, 16 }
  0x3e   :  { %87 = vxpose.xlu1.b32.end [16/16] (narrow) %v39_v30, 16 }
  0x3f   :  { %55 = vxpose.xlu0.b32.end [16/16] (narrow) %v23_v31, 16 }
  0x42   :  { %505 = vxpose.xlu1.b32.start [1/16] (narrow) %v918_v32, 16 }
  0x43   :  { %473 = vxpose.xlu0.b32.start [1/16] (narrow) %v902_v33, 16 }
  0x46   :  { %506 = vxpose.xlu1.b32.cont [2/16] (narrow) %v919_v34, 16 }
  0x47   :  { %474 = vxpose.xlu0.b32.cont [2/16] (narrow) %v903_v35, 16 }
  0x4a   :  { %507 = vxpose.xlu1.b32.cont [3/16] (narrow) %v920_v36, 16 }
  0x4b   :  { %475 = vxpose.xlu0.b32.cont [3/16] (narrow) %v904_v37, 16 }
  0x4e   :  { %508 = vxpose.xlu1.b32.cont [4/16] (narrow) %v921_v38, 16 }
  0x4f   :  { %476 = vxpose.xlu0.b32.cont [4/16] (narrow) %v905_v39, 16 }
  0x52   :  { %509 = vxpose.xlu1.b32.cont [5/16] (narrow) %v922_v40, 16 }
  0x53   :  { %477 = vxpose.xlu0.b32.cont [5/16] (narrow) %v906_v41, 16 }
  0x56   :  { %510 = vxpose.xlu1.b32.cont [6/16] (narrow) %v923_v42, 16 }
  0x57   :  { %478 = vxpose.xlu0.b32.cont [6/16] (narrow) %v907_v43, 16 }
  0x5a   :  { %511 = vxpose.xlu1.b32.cont [7/16] (narrow) %v924_v44, 16 }
  0x5b   :  { %479 = vxpose.xlu0.b32.cont [7/16] (narrow) %v908_v45, 16 }
  0x5e   :  { %512 = vxpose.xlu1.b32.cont [8/16] (narrow) %v925_v46, 16 }
  0x5f   :  { %480 = vxpose.xlu0.b32.cont [8/16] (narrow) %v909_v47, 16 }
  0x62   :  { %513 = vxpose.xlu1.b32.cont [9/16] (narrow) %v926_v48, 16 }
  0x63   :  { %481 = vxpose.xlu0.b32.cont [9/16] (narrow) %v910_v49, 16 }
  0x66   :  { %514 = vxpose.xlu1.b32.cont [10/16] (narrow) %v927_v50, 16 }
  0x67   :  { %482 = vxpose.xlu0.b32.cont [10/16] (narrow) %v911_v51, 16 }
  0x6a   :  { %515 = vxpose.xlu1.b32.cont [11/16] (narrow) %v928_v52, 16 }
  0x6b   :  { %483 = vxpose.xlu0.b32.cont [11/16] (narrow) %v912_v53, 16 }
  0x6e   :  { %516 = vxpose.xlu1.b32.cont [12/16] (narrow) %v929_v54, 16 }
  0x6f   :  { %484 = vxpose.xlu0.b32.cont [12/16] (narrow) %v913_v55, 16 }
  0x72   :  { %517 = vxpose.xlu1.b32.cont [13/16] (narrow) %v930_v56, 16 }
  0x73   :  { %485 = vxpose.xlu0.b32.cont [13/16] (narrow) %v914_v57, 16 }
  0x76   :  { %518 = vxpose.xlu1.b32.cont [14/16] (narrow) %v931_v58, 16 }
  0x77   :  { %486 = vxpose.xlu0.b32.cont [14/16] (narrow) %v915_v59, 16 }
  0x7a   :  { %519 = vxpose.xlu1.b32.cont [15/16] (narrow) %v932_v60, 16 }
  0x7b   :  { %487 = vxpose.xlu0.b32.cont [15/16] (narrow) %v916_v61, 16 }
  0x7e   :  { %520 = vxpose.xlu1.b32.end [16/16] (narrow) %v933_v62, 16 }
  0x7f   :  { %488 = vxpose.xlu0.b32.end [16/16] (narrow) %v917_v63, 16 }
  0x82   :  { %v88_v0 = vpop.trf.xlu1 }
  0x83   :  { %v56_v1 = vpop.trf.xlu0 }
  0x86   :  { %v89_v2 = vpop.trf.xlu1 }
  0x87   :  { %v57_v3 = vpop.trf.xlu0  ;;  %v111_v4 = vadd.f32 %v89_v2, %v88_v0 }
  0x88   :  { %v104_v5 = vadd.f32 %v57_v3, %v56_v1 }
  0x89   :  { %v112_v6 = vrot.slane %v111_v4, 4 }
  0x8a   :  { %v105_v7 = vrot.slane %v104_v5, 4 }
  0x8b   :  { %v113_v8 = vadd.f32 %v112_v6, %v111_v4 }
  0x8c   :  { %v106_v9 = vadd.f32 %v105_v7, %v104_v5 }
  0x8d   :  { %v114_v10 = vrot.slane %v113_v8, 2 }
  0x8e   :  { %v107_v11 = vrot.slane %v106_v9, 2 }
  0x8f   :  { %v115_v12 = vadd.f32 %v114_v10, %v113_v8 }
  0x90   :  { %v108_v13 = vadd.f32 %v107_v11, %v106_v9 }
  0x91   :  { %v116_v14 = vrot.slane %v115_v12, 1 }
  0x92   :  { %v109_v15 = vrot.slane %v108_v13, 1 }
  0x93   :  { %v117_v16 = vadd.f32 %v116_v14, %v115_v12 }
  0x94   :  { %v110_v17 = vadd.f32 %v109_v15, %v108_v13 }
  0x95   :  { %v1370_v18 = vmul.f32 0.0625, %v117_v16 }
  0x96   :  { %v1372_v19 = vmul.f32 0.0625, %v110_v17 }
  0x97   :  { %vm123_vm1 = vcmp.ge.f32.partialorder %v1370_v18, 3.999 }
  0x98   :  { %vm122_vm0 = vcmp.ge.f32.partialorder %v1372_v19, 3.999  ;;  %v871_v22 = vsel %vm123_vm1, 1.0, %v1167_v20 }
  0x99   :  { %v870_v21 = vsel %vm122_vm0, 1.0, %v1167_v20  ;;  %v129_v24 = vmul.f32 3.999, %v871_v22  ;;  %vm320_vm0 = vcmask 1044480  }
  0x9a   :  { %v128_v23 = vmul.f32 3.999, %v870_v21 }
  0x9b   :  { %v131_v26 = vsub.f32 %v1370_v18, %v129_v24 }
  0x9c   :  { %v130_v25 = vsub.f32 %v1372_v19, %v128_v23 }
  0x9d   :  { %v133_v28 = vadd.f32 %v131_v26, %v1370_v18 }
  0x9e   :  { %v132_v27 = vadd.f32 %v130_v25, %v1372_v19 }
  0x9f   :  { %vm135_vm3 = vcmp.ge.f32.partialorder %v133_v28, 3.999 }
  0xa0   :  { %vm134_vm2 = vcmp.ge.f32.partialorder %v132_v27, 3.999  ;;  %v873_v30 = vsel %vm135_vm3, 1.0, %v1167_v20  ;;  %vm323_vm3 = vcmask 1045504  }
  0xa1   :  { %v872_v29 = vsel %vm134_vm2, 1.0, %v1167_v20  ;;  %v141_v32 = vmul.f32 3.999, %v873_v30  ;;  %v310_v62 = vsel %vm308_vm10, %v871_v22, %v873_v30 }
  0xa2   :  { %v140_v31 = vmul.f32 3.999, %v872_v29  ;;  %v309_v61 = vsel %vm308_vm10, %v870_v21, %v872_v29 }
  0xa3   :  { %v143_v34 = vsub.f32 %v133_v28, %v141_v32 }
  0xa4   :  { %v142_v33 = vsub.f32 %v132_v27, %v140_v31 }
  0xa5   :  { %v145_v36 = vadd.f32 %v143_v34, %v1370_v18 }
  0xa6   :  { %v144_v35 = vadd.f32 %v142_v33, %v1372_v19 }
  0xa7   :  { %vm147_vm5 = vcmp.ge.f32.partialorder %v145_v36, 3.999 }
  0xa8   :  { %vm146_vm4 = vcmp.ge.f32.partialorder %v144_v35, 3.999  ;;  %v875_v38 = vsel %vm147_vm5, 1.0, %v1167_v20 }
  0xa9   :  { %v874_v37 = vsel %vm146_vm4, 1.0, %v1167_v20  ;;  %v153_v40 = vmul.f32 3.999, %v875_v38  ;;  %v313_v6 = vsel %vm311_vm11, %v310_v62, %v875_v38  ;;  %vm326_vm4 = vcmask 1046528  }
  0xaa   :  { %v152_v39 = vmul.f32 3.999, %v874_v37  ;;  %v312_v5 = vsel %vm311_vm11, %v309_v61, %v874_v37 }
  0xab   :  { %v155_v42 = vsub.f32 %v145_v36, %v153_v40 }
  0xac   :  { %v154_v41 = vsub.f32 %v144_v35, %v152_v39 }
  0xad   :  { %v157_v44 = vadd.f32 %v155_v42, %v1370_v18 }
  0xae   :  { %v156_v43 = vadd.f32 %v154_v41, %v1372_v19 }
  0xaf   :  { %vm159_vm7 = vcmp.ge.f32.partialorder %v157_v44, 3.999 }
  0xb0   :  { %vm158_vm6 = vcmp.ge.f32.partialorder %v156_v43, 3.999  ;;  %v877_v46 = vsel %vm159_vm7, 1.0, %v1167_v20 }
  0xb1   :  { %v876_v45 = vsel %vm158_vm6, 1.0, %v1167_v20  ;;  %v165_v48 = vmul.f32 3.999, %v877_v46  ;;  %v316_v12 = vsel %vm314_vm14, %v313_v6, %v877_v46 }
  0xb2   :  { %v164_v47 = vmul.f32 3.999, %v876_v45  ;;  %v315_v11 = vsel %vm314_vm14, %v312_v5, %v876_v45 }
  0xb3   :  { %v167_v50 = vsub.f32 %v157_v44, %v165_v48 }
  0xb4   :  { %v166_v49 = vsub.f32 %v156_v43, %v164_v47 }
  0xb5   :  { %v169_v52 = vadd.f32 %v167_v50, %v1370_v18 }
  0xb6   :  { %v168_v51 = vadd.f32 %v166_v49, %v1372_v19 }
  0xb7   :  { %vm171_vm9 = vcmp.ge.f32.partialorder %v169_v52, 3.999 }
  0xb8   :  { %vm170_vm8 = vcmp.ge.f32.partialorder %v168_v51, 3.999  ;;  %v879_v54 = vsel %vm171_vm9, 1.0, %v1167_v20 }
  0xb9   :  { %v878_v53 = vsel %vm170_vm8, 1.0, %v1167_v20  ;;  %v177_v56 = vmul.f32 3.999, %v879_v54  ;;  %v319_v23 = vsel %vm317_vm15, %v316_v12, %v879_v54 }
  0xba   :  { %v176_v55 = vmul.f32 3.999, %v878_v53  ;;  %v318_v22 = vsel %vm317_vm15, %v315_v11, %v878_v53 }
  0xbb   :  { %v179_v58 = vsub.f32 %v169_v52, %v177_v56 }
  0xbc   :  { %v178_v57 = vsub.f32 %v168_v51, %v176_v55 }
  0xbd   :  { %v181_v60 = vadd.f32 %v179_v58, %v1370_v18 }
  0xbe   :  { %v180_v59 = vadd.f32 %v178_v57, %v1372_v19 }
  0xbf   :  { %vm183_vm13 = vcmp.ge.f32.partialorder %v181_v60, 3.999 }
  0xc0   :  { %vm182_vm12 = vcmp.ge.f32.partialorder %v180_v59, 3.999  ;;  %v881_v0 = vsel %vm183_vm13, 1.0, %v1167_v20 }
  0xc1   :  { %v880_v63 = vsel %vm182_vm12, 1.0, %v1167_v20  ;;  %v189_v2 = vmul.f32 3.999, %v881_v0  ;;  %v322_v33 = vsel %vm320_vm0, %v319_v23, %v881_v0 }
  0xc2   :  { %v188_v1 = vmul.f32 3.999, %v880_v63  ;;  %v521_v3 = vpop.trf.xlu1  ;;  %v321_v32 = vsel %vm320_vm0, %v318_v22, %v880_v63 }
  0xc3   :  { %v489_v4 = vpop.trf.xlu0  ;;  %v191_v8 = vsub.f32 %v181_v60, %v189_v2 }
  0xc4   :  { %v190_v7 = vsub.f32 %v180_v59, %v188_v1 }
  0xc5   :  { %v193_v10 = vadd.f32 %v191_v8, %v1370_v18 }
  0xc6   :  { %v192_v9 = vadd.f32 %v190_v7, %v1372_v19  ;;  %v522_v13 = vpop.trf.xlu1 }
  0xc7   :  { %v490_v14 = vpop.trf.xlu0  ;;  %v544_v15 = vadd.f32 %v522_v13, %v521_v3  ;;  %vm195_vm2 = vcmp.ge.f32.partialorder %v193_v10, 3.999 }
  0xc8   :  { %v537_v16 = vadd.f32 %v490_v14, %v489_v4  ;;  %vm194_vm1 = vcmp.ge.f32.partialorder %v192_v9, 3.999  ;;  %v883_v21 = vsel %vm195_vm2, 1.0, %v1167_v20 }
  0xc9   :  { %v882_v17 = vsel %vm194_vm1, 1.0, %v1167_v20  ;;  %v545_v24 = vrot.slane %v544_v15, 4  ;;  %v201_v27 = vmul.f32 3.999, %v883_v21  ;;  %v325_v43 = vsel %vm323_vm3, %v322_v33, %v883_v21 }
  0xca   :  { %v538_v25 = vrot.slane %v537_v16, 4  ;;  %v200_v26 = vmul.f32 3.999, %v882_v17  ;;  %v324_v42 = vsel %vm323_vm3, %v321_v32, %v882_v17 }
  0xcb   :  { %v546_v28 = vadd.f32 %v545_v24, %v544_v15  ;;  %v203_v31 = vsub.f32 %v193_v10, %v201_v27 }
  0xcc   :  { %v539_v29 = vadd.f32 %v538_v25, %v537_v16  ;;  %v202_v30 = vsub.f32 %v192_v9, %v200_v26 }
  0xcd   :  { %v547_v34 = vrot.slane %v546_v28, 2  ;;  %v205_v37 = vadd.f32 %v203_v31, %v1370_v18 }
  0xce   :  { %v540_v35 = vrot.slane %v539_v29, 2  ;;  %v204_v36 = vadd.f32 %v202_v30, %v1372_v19 }
  0xcf   :  { %v548_v38 = vadd.f32 %v547_v34, %v546_v28  ;;  %vm207_vm6 = vcmp.ge.f32.partialorder %v205_v37, 3.999 }
  0xd0   :  { %v541_v39 = vadd.f32 %v540_v35, %v539_v29  ;;  %vm206_vm5 = vcmp.ge.f32.partialorder %v204_v36, 3.999  ;;  %v885_v41 = vsel %vm207_vm6, 1.0, %v1167_v20 }
  0xd1   :  { %v884_v40 = vsel %vm206_vm5, 1.0, %v1167_v20  ;;  %v549_v44 = vrot.slane %v548_v38, 1  ;;  %v213_v46 = vmul.f32 3.999, %v885_v41  ;;  %v328_v48 = vsel %vm326_vm4, %v325_v43, %v885_v41 }
  0xd2   :  { %v542_v45 = vrot.slane %v541_v39, 1  ;;  %v327_v47 = vsel %vm326_vm4, %v324_v42, %v884_v40  ;;  %v212_v49 = vmul.f32 3.999, %v884_v40 }
  0xd3   :  { %v550_v50 = vadd.f32 %v549_v44, %v548_v38  ;;  %v215_v52 = vsub.f32 %v205_v37, %v213_v46  ;;  %v999_v53 = vpack.i.bf16 %v328_v48, %v327_v47 }
  0xd4   :  { %v543_v51 = vadd.f32 %v542_v45, %v541_v39  ;;  %v214_v54 = vsub.f32 %v204_v36, %v212_v49 }
  0xd5   :  { %v1422_v55 = vmul.f32 0.0625, %v550_v50  ;;  %v217_v57 = vadd.f32 %v215_v52, %v1370_v18  ;;  %1000 = vxpose.xlu0.b32.start [1/2] (short) %v999_v53, 128 }
  0xd6   :  { %v1424_v56 = vmul.f32 0.0625, %v543_v51  ;;  %v216_v58 = vadd.f32 %v214_v54, %v1372_v19 }
  0xd7   :  { %vm219_vm7 = vcmp.ge.f32.partialorder %v217_v57, 3.999  ;;  %vm556_vm9 = vcmp.ge.f32.partialorder %v1422_v55, 3.999 }
  0xd8   :  { %vm555_vm8 = vcmp.ge.f32.partialorder %v1424_v56, 3.999  ;;  %v1431_v59 = vsel %vm219_vm7, 1.0, %v1167_v20  ;;  %vm218_vm12 = vcmp.ge.f32.partialorder %v216_v58, 3.999  ;;  %v1437_v61 = vsel %vm556_vm9, 1.0, %v1167_v20 }
  0xd9   :  { %v1434_v60 = vsel %vm555_vm8, 1.0, %v1167_v20  ;;  %v225_v62 = vmul.f32 3.999, %v1431_v59  ;;  %v1441_v63 = vsel %vm218_vm12, 1.0, %v1167_v20  ;;  %v562_v2 = vmul.f32 3.999, %v1437_v61 }
  0xda   :  { %v561_v0 = vmul.f32 3.999, %v1434_v60  ;;  %v224_v1 = vmul.f32 3.999, %v1441_v63 }
  0xdb   :  { %v227_v3 = vsub.f32 %v217_v57, %v225_v62  ;;  %v564_v6 = vsub.f32 %v1422_v55, %v562_v2 }
  0xdc   :  { %v563_v4 = vsub.f32 %v1424_v56, %v561_v0  ;;  %v226_v5 = vsub.f32 %v216_v58, %v224_v1 }
  0xdd   :  { %v229_v7 = vadd.f32 %v227_v3, %v1370_v18  ;;  %v566_v10 = vadd.f32 %v564_v6, %v1422_v55 }
  0xde   :  { %v565_v8 = vadd.f32 %v563_v4, %v1424_v56  ;;  %v228_v9 = vadd.f32 %v226_v5, %v1372_v19 }
  0xdf   :  { %vm231_vm13 = vcmp.ge.f32.partialorder %v229_v7, 3.999  ;;  %vm568_vm5 = vcmp.ge.f32.partialorder %v566_v10, 3.999 }
  0xe0   :  { %vm567_vm1 = vcmp.ge.f32.partialorder %v565_v8, 3.999  ;;  %v1453_v11 = vsel %vm231_vm13, 1.0, %v1167_v20  ;;  %vm230_vm2 = vcmp.ge.f32.partialorder %v228_v9, 3.999  ;;  %v1463_v15 = vsel %vm568_vm5, 1.0, %v1167_v20 }
  0xe1   :  { %v1456_v12 = vsel %vm567_vm1, 1.0, %v1167_v20  ;;  %v237_v13 = vmul.f32 3.999, %v1453_v11  ;;  %v1460_v14 = vsel %vm230_vm2, 1.0, %v1167_v20  ;;  %v574_v21 = vmul.f32 3.999, %v1463_v15 }
  0xe2   :  { %v236_v16 = vmul.f32 3.999, %v1460_v14  ;;  %v573_v17 = vmul.f32 3.999, %v1456_v12 }
  0xe3   :  { %v239_v22 = vsub.f32 %v229_v7, %v237_v13  ;;  %v576_v25 = vsub.f32 %v566_v10, %v574_v21 }
  0xe4   :  { %v238_v23 = vsub.f32 %v228_v9, %v236_v16  ;;  %v575_v24 = vsub.f32 %v565_v8, %v573_v17 }
  0xe5   :  { %v241_v26 = vadd.f32 %v239_v22, %v1370_v18  ;;  %v578_v29 = vadd.f32 %v576_v25, %v1422_v55 }
  0xe6   :  { %v240_v27 = vadd.f32 %v238_v23, %v1372_v19  ;;  %v577_v28 = vadd.f32 %v575_v24, %v1424_v56 }
  0xe7   :  { %vm243_vm6 = vcmp.ge.f32.partialorder %v241_v26, 3.999  ;;  %vm580_vm9 = vcmp.ge.f32.partialorder %v578_v29, 3.999 }
  0xe8   :  { %vm242_vm7 = vcmp.ge.f32.partialorder %v240_v27, 3.999  ;;  %v1473_v30 = vsel %vm243_vm6, 1.0, %v1167_v20  ;;  %vm579_vm8 = vcmp.ge.f32.partialorder %v577_v28, 3.999  ;;  %v1484_v35 = vsel %vm580_vm9, 1.0, %v1167_v20 }
  0xe9   :  { %v1476_v31 = vsel %vm242_vm7, 1.0, %v1167_v20  ;;  %v249_v32 = vmul.f32 3.999, %v1473_v30  ;;  %v1481_v34 = vsel %vm579_vm8, 1.0, %v1167_v20  ;;  %v586_v38 = vmul.f32 3.999, %v1484_v35 }
  0xea   :  { %v248_v33 = vmul.f32 3.999, %v1476_v31  ;;  %v585_v37 = vmul.f32 3.999, %v1481_v34 }
  0xeb   :  { %v251_v36 = vsub.f32 %v241_v26, %v249_v32  ;;  %v588_v42 = vsub.f32 %v578_v29, %v586_v38 }
  0xec   :  { %v250_v39 = vsub.f32 %v240_v27, %v248_v33  ;;  %v587_v41 = vsub.f32 %v577_v28, %v585_v37 }
  0xed   :  { %v253_v40 = vadd.f32 %v251_v36, %v1370_v18  ;;  %v590_v45 = vadd.f32 %v588_v42, %v1422_v55  ;;  %v330_v36 = vsel %vm308_vm10, %v1431_v59, %v1453_v11  ;;  %v742_v11 = vsel %vm308_vm10, %v1437_v61, %v1463_v15 }
  0xee   :  { %v252_v43 = vadd.f32 %v250_v39, %v1372_v19  ;;  %v589_v44 = vadd.f32 %v587_v41, %v1424_v56 }
  0xef   :  { %vm255_vm12 = vcmp.ge.f32.partialorder %v253_v40, 3.999  ;;  %vm592_vm2 = vcmp.ge.f32.partialorder %v590_v45, 3.999 }
  0xf0   :  { %vm254_vm13 = vcmp.ge.f32.partialorder %v252_v43, 3.999  ;;  %v1493_v46 = vsel %vm255_vm12, 1.0, %v1167_v20  ;;  %vm591_vm1 = vcmp.ge.f32.partialorder %v589_v44, 3.999  ;;  %v1504_v52 = vsel %vm592_vm2, 1.0, %v1167_v20 }
  0xf1   :  { %v1496_v47 = vsel %vm254_vm13, 1.0, %v1167_v20  ;;  %v261_v48 = vmul.f32 3.999, %v1493_v46  ;;  %v1501_v50 = vsel %vm591_vm1, 1.0, %v1167_v20  ;;  %v598_v57 = vmul.f32 3.999, %v1504_v52 }
  0xf2   :  { %v260_v49 = vmul.f32 3.999, %v1496_v47  ;;  %v597_v53 = vmul.f32 3.999, %v1501_v50 }
  0xf3   :  { %v263_v51 = vsub.f32 %v253_v40, %v261_v48  ;;  %v600_v1 = vsub.f32 %v590_v45, %v598_v57  ;;  %v329_v40 = vsel %vm308_vm10, %v1441_v63, %v1460_v14  ;;  %v332_v45 = vsel %vm311_vm11, %v330_v36, %v1473_v30 }
  0xf4   :  { %v262_v54 = vsub.f32 %v252_v43, %v260_v49  ;;  %v599_v62 = vsub.f32 %v589_v44, %v597_v53  ;;  %v741_v43 = vsel %vm308_vm10, %v1434_v60, %v1456_v12  ;;  %v331_v63 = vsel %vm311_vm11, %v329_v40, %v1476_v31 }
  0xf5   :  { %v265_v58 = vadd.f32 %v263_v51, %v1370_v18  ;;  %v602_v4 = vadd.f32 %v600_v1, %v1422_v55  ;;  %v743_v49 = vsel %vm311_vm11, %v741_v43, %v1481_v34  ;;  %v334_v60 = vsel %vm314_vm14, %v332_v45, %v1493_v46 }
  0xf6   :  { %v264_v0 = vadd.f32 %v262_v54, %v1372_v19  ;;  %v601_v2 = vadd.f32 %v599_v62, %v1424_v56  ;;  %v744_v30 = vsel %vm311_vm11, %v742_v11, %v1484_v35  ;;  %v333_v15 = vsel %vm314_vm14, %v331_v63, %v1496_v47 }
  0xf7   :  { %vm267_vm5 = vcmp.ge.f32.partialorder %v265_v58, 3.999  ;;  %vm604_vm8 = vcmp.ge.f32.partialorder %v602_v4, 3.999  ;;  %v745_v46 = vsel %vm314_vm14, %v743_v49, %v1501_v50  ;;  %v746_v35 = vsel %vm314_vm14, %v744_v30, %v1504_v52 }
  0xf8   :  { %vm266_vm6 = vcmp.ge.f32.partialorder %v264_v0, 3.999  ;;  %v895_v3 = vsel %vm267_vm5, 1.0, %v1167_v20  ;;  %vm603_vm7 = vcmp.ge.f32.partialorder %v601_v2, 3.999  ;;  %v1519_v10 = vsel %vm604_vm8, 1.0, %v1167_v20 }
  0xf9   :  { %v1514_v5 = vsel %vm266_vm6, 1.0, %v1167_v20  ;;  %v273_v6 = vmul.f32 3.999, %v895_v3  ;;  %v942_v8 = vsel %vm603_vm7, 1.0, %v1167_v20  ;;  %v610_v17 = vmul.f32 3.999, %v1519_v10 }
  0xfa   :  { %v272_v7 = vmul.f32 3.999, %v1514_v5  ;;  %v609_v13 = vmul.f32 3.999, %v942_v8  ;;  %v335_v1 = vsel %vm317_vm15, %v333_v15, %v1514_v5  ;;  %v747_v50 = vsel %vm317_vm15, %v745_v46, %v942_v8 }
  0xfb   :  { %v275_v9 = vsub.f32 %v265_v58, %v273_v6  ;;  %v612_v24 = vsub.f32 %v602_v4, %v610_v17  ;;  %v336_v58 = vsel %vm317_vm15, %v334_v60, %v895_v3  ;;  %v748_v52 = vsel %vm317_vm15, %v746_v35, %v1519_v10 }
  0xfc   :  { %v274_v16 = vsub.f32 %v264_v0, %v272_v7  ;;  %v611_v22 = vsub.f32 %v601_v2, %v609_v13 }
  0xfd   :  { %v277_v21 = vadd.f32 %v275_v9, %v1370_v18  ;;  %v614_v27 = vadd.f32 %v612_v24, %v1422_v55 }
  0xfe   :  { %v276_v23 = vadd.f32 %v274_v16, %v1372_v19  ;;  %v613_v25 = vadd.f32 %v611_v22, %v1424_v56 }
  0xff   :  { %vm279_vm9 = vcmp.ge.f32.partialorder %v277_v21, 3.999  ;;  %vm616_vm1 = vcmp.ge.f32.partialorder %v614_v27, 3.999 }
 0x100   :  { %vm278_vm12 = vcmp.ge.f32.partialorder %v276_v23, 3.999  ;;  %v897_v26 = vsel %vm279_vm9, 1.0, %v1167_v20  ;;  %vm615_vm13 = vcmp.ge.f32.partialorder %v613_v25, 3.999  ;;  %v945_v38 = vsel %vm616_vm1, 1.0, %v1167_v20 }
 0x101   :  { %v896_v28 = vsel %vm278_vm12, 1.0, %v1167_v20  ;;  %v285_v29 = vmul.f32 3.999, %v897_v26  ;;  %v944_v33 = vsel %vm615_vm13, 1.0, %v1167_v20  ;;  %v622_v42 = vmul.f32 3.999, %v945_v38 }
 0x102   :  { %v284_v32 = vmul.f32 3.999, %v896_v28  ;;  %v621_v39 = vmul.f32 3.999, %v944_v33  ;;  %v338_v6 = vsel %vm320_vm0, %v336_v58, %v897_v26  ;;  %v337_v9 = vsel %vm320_vm0, %v335_v1, %v896_v28 }
 0x103   :  { %v287_v37 = vsub.f32 %v277_v21, %v285_v29  ;;  %v624_v14 = vsub.f32 %v614_v27, %v622_v42  ;;  %v749_v16 = vsel %vm320_vm0, %v747_v50, %v944_v33 }
 0x104   :  { %v286_v41 = vsub.f32 %v276_v23, %v284_v32  ;;  %v623_v59 = vsub.f32 %v613_v25, %v621_v39 }
 0x105   :  { %v289_v44 = vadd.f32 %v287_v37, %v1370_v18  ;;  %v626_v31 = vadd.f32 %v624_v14, %v1422_v55 }
 0x106   :  { %v288_v48 = vadd.f32 %v286_v41, %v1372_v19  ;;  %v625_v12 = vadd.f32 %v623_v59, %v1424_v56 }
 0x107   :  { %vm291_vm2 = vcmp.ge.f32.partialorder %v289_v44, 3.999  ;;  %vm628_vm7 = vcmp.ge.f32.partialorder %v626_v31, 3.999 }
 0x108   :  { %vm290_vm5 = vcmp.ge.f32.partialorder %v288_v48, 3.999  ;;  %v899_v61 = vsel %vm291_vm2, 1.0, %v1167_v20  ;;  %vm627_vm6 = vcmp.ge.f32.partialorder %v625_v12, 3.999  ;;  %v947_v47 = vsel %vm628_vm7, 1.0, %v1167_v20 }
 0x109   :  { %v898_v51 = vsel %vm290_vm5, 1.0, %v1167_v20  ;;  %v297_v34 = vmul.f32 3.999, %v899_v61  ;;  %v946_v54 = vsel %vm627_vm6, 1.0, %v1167_v20  ;;  %v634_v2 = vmul.f32 3.999, %v947_v47 }
 0x10a   :  { %v296_v53 = vmul.f32 3.999, %v898_v51  ;;  %v633_v62 = vmul.f32 3.999, %v946_v54  ;;  %v340_v5 = vsel %vm323_vm3, %v338_v6, %v899_v61  ;;  %v339_v21 = vsel %vm323_vm3, %v337_v9, %v898_v51 }
 0x10b   :  { %v299_v57 = vsub.f32 %v289_v44, %v297_v34  ;;  %v636_v13 = vsub.f32 %v626_v31, %v634_v2  ;;  %v751_v23 = vsel %vm323_vm3, %v749_v16, %v946_v54 }
 0x10c   :  { %v298_v0 = vsub.f32 %v288_v48, %v296_v53  ;;  %v635_v7 = vsub.f32 %v625_v12, %v633_v62 }
 0x10d   :  { %v301_v4 = vadd.f32 %v299_v57, %v1370_v18  ;;  %v750_v18 = vsel %vm320_vm0, %v748_v52, %v945_v38  ;;  %v638_v10 = vadd.f32 %v636_v13, %v1422_v55 }
 0x10e   :  { %v300_v3 = vadd.f32 %v298_v0, %v1372_v19  ;;  %v637_v8 = vadd.f32 %v635_v7, %v1424_v56  ;;  %v752_v26 = vsel %vm323_vm3, %v750_v18, %v947_v47 }
 0x10f   :  { %vm303_vm8 = vcmp.ge.f32.partialorder %v301_v4, 3.999  ;;  %vm640_vm13 = vcmp.ge.f32.partialorder %v638_v10, 3.999 }
 0x110   :  { %vm302_vm9 = vcmp.ge.f32.partialorder %v300_v3, 3.999  ;;  %v901_v17 = vsel %vm303_vm8, 1.0, %v1167_v20  ;;  %vm639_vm12 = vcmp.ge.f32.partialorder %v637_v8, 3.999  ;;  %v949_v28 = vsel %vm640_vm13, 1.0, %v1167_v20 }
 0x111   :  { %v900_v19 = vsel %vm302_vm9, 1.0, %v1167_v20  ;;  %v342_v22 = vsel %vm326_vm4, %v340_v5, %v901_v17  ;;  %v948_v25 = vsel %vm639_vm12, 1.0, %v1167_v20  ;;  %v646_v33 = vmul.f32 3.999, %v949_v28 }
 0x112   :  { %v341_v24 = vsel %vm326_vm4, %v339_v21, %v900_v19  ;;  %v753_v29 = vsel %vm326_vm4, %v751_v23, %v948_v25  ;;  %v645_v32 = vmul.f32 3.999, %v948_v25  ;;  %v754_v36 = vsel %vm326_vm4, %v752_v26, %v949_v28 }
 0x113   :  { %v1001_v27 = vpack.i.bf16 %v342_v22, %v341_v24  ;;  %v1083_v37 = vpack.i.bf16 %v754_v36, %v753_v29  ;;  %v648_v39 = vsub.f32 %v638_v10, %v646_v33 }
 0x114   :  { %v647_v38 = vsub.f32 %v637_v8, %v645_v32 }
 0x115   :  { %1002 = vxpose.xlu0.b32.end [2/2] (short) %v1001_v27, 128  ;;  %1084 = vxpose.xlu1.b32.start [1/2] (short) %v1083_v37, 128  ;;  %v650_v41 = vadd.f32 %v648_v39, %v1422_v55 }
 0x116   :  { %v649_v40 = vadd.f32 %v647_v38, %v1424_v56 }
 0x117   :  { %vm652_vm2 = vcmp.ge.f32.partialorder %v650_v41, 3.999 }
 0x118   :  { %vm651_vm1 = vcmp.ge.f32.partialorder %v649_v40, 3.999  ;;  %v1598_v43 = vsel %vm652_vm2, 1.0, %v1167_v20 }
 0x119   :  { %v1595_v42 = vsel %vm651_vm1, 1.0, %v1167_v20  ;;  %v658_v45 = vmul.f32 3.999, %v1598_v43 }
 0x11a   :  { %v657_v44 = vmul.f32 3.999, %v1595_v42 }
 0x11b   :  { %v660_v11 = vsub.f32 %v650_v41, %v658_v45 }
 0x11c   :  { %v659_v59 = vsub.f32 %v649_v40, %v657_v44 }
 0x11d   :  { %v662_v63 = vadd.f32 %v660_v11, %v1422_v55 }
 0x11e   :  { %v661_v48 = vadd.f32 %v659_v59, %v1424_v56 }
 0x11f   :  { %vm664_vm6 = vcmp.ge.f32.partialorder %v662_v63, 3.999 }
 0x120   :  { %vm663_vm5 = vcmp.ge.f32.partialorder %v661_v48, 3.999  ;;  %v953_v49 = vsel %vm664_vm6, 1.0, %v1167_v20 }
 0x121   :  { %v952_v14 = vsel %vm663_vm5, 1.0, %v1167_v20  ;;  %v670_v12 = vmul.f32 3.999, %v953_v49  ;;  %v756_v33 = vsel %vm308_vm10, %v1598_v43, %v953_v49 }
 0x122   :  { %v669_v60 = vmul.f32 3.999, %v952_v14  ;;  %v755_v29 = vsel %vm308_vm10, %v1595_v42, %v952_v14 }
 0x123   :  { %v672_v61 = vsub.f32 %v662_v63, %v670_v12 }
 0x124   :  { %v671_v30 = vsub.f32 %v661_v48, %v669_v60 }
 0x125   :  { %v674_v31 = vadd.f32 %v672_v61, %v1422_v55 }
 0x126   :  { %v673_v15 = vadd.f32 %v671_v30, %v1424_v56 }
 0x127   :  { %vm676_vm8 = vcmp.ge.f32.partialorder %v674_v31, 3.999 }
 0x128   :  { %vm675_vm7 = vcmp.ge.f32.partialorder %v673_v15, 3.999  ;;  %v955_v34 = vsel %vm676_vm8, 1.0, %v1167_v20 }
 0x129   :  { %v954_v51 = vsel %vm675_vm7, 1.0, %v1167_v20  ;;  %v682_v53 = vmul.f32 3.999, %v955_v34  ;;  %v758_v39 = vsel %vm311_vm11, %v756_v33, %v955_v34 }
 0x12a   :  { %v681_v46 = vmul.f32 3.999, %v954_v51  ;;  %v757_v37 = vsel %vm311_vm11, %v755_v29, %v954_v51  ;;  %vm407_vm11 = vcmask 130048  }
 0x12b   :  { %v684_v35 = vsub.f32 %v674_v31, %v682_v53 }
 0x12c   :  { %v683_v54 = vsub.f32 %v673_v15, %v681_v46 }
 0x12d   :  { %v686_v58 = vadd.f32 %v684_v35, %v1422_v55 }
 0x12e   :  { %v685_v57 = vadd.f32 %v683_v54, %v1424_v56 }
 0x12f   :  { %vm688_vm12 = vcmp.ge.f32.partialorder %v686_v58, 3.999 }
 0x130   :  { %vm687_vm9 = vcmp.ge.f32.partialorder %v685_v57, 3.999  ;;  %v957_v62 = vsel %vm688_vm12, 1.0, %v1167_v20 }
 0x131   :  { %v956_v47 = vsel %vm687_vm9, 1.0, %v1167_v20  ;;  %v694_v1 = vmul.f32 3.999, %v957_v62  ;;  %v760_v44 = vsel %vm314_vm14, %v758_v39, %v957_v62 }
 0x132   :  { %v693_v0 = vmul.f32 3.999, %v956_v47  ;;  %v759_v40 = vsel %vm314_vm14, %v757_v37, %v956_v47 }
 0x133   :  { %v696_v50 = vsub.f32 %v686_v58, %v694_v1 }
 0x134   :  { %v695_v2 = vsub.f32 %v685_v57, %v693_v0 }
 0x135   :  { %v698_v6 = vadd.f32 %v696_v50, %v1422_v55 }
 0x136   :  { %v697_v4 = vadd.f32 %v695_v2, %v1424_v56 }
 0x137   :  { %vm700_vm1 = vcmp.ge.f32.partialorder %v698_v6, 3.999 }
 0x138   :  { %vm699_vm13 = vcmp.ge.f32.partialorder %v697_v4, 3.999  ;;  %v959_v52 = vsel %vm700_vm1, 1.0, %v1167_v20 }
 0x139   :  { %v958_v7 = vsel %vm699_vm13, 1.0, %v1167_v20  ;;  %v706_v9 = vmul.f32 3.999, %v959_v52  ;;  %v762_v42 = vsel %vm317_vm15, %v760_v44, %v959_v52 }
 0x13a   :  { %v705_v3 = vmul.f32 3.999, %v958_v7  ;;  %v761_v45 = vsel %vm317_vm15, %v759_v40, %v958_v7 }
 0x13b   :  { %v708_v16 = vsub.f32 %v698_v6, %v706_v9 }
 0x13c   :  { %v707_v13 = vsub.f32 %v697_v4, %v705_v3 }
 0x13d   :  { %v710_v8 = vadd.f32 %v708_v16, %v1422_v55 }
 0x13e   :  { %v709_v5 = vadd.f32 %v707_v13, %v1424_v56 }
 0x13f   :  { %vm712_vm5 = vcmp.ge.f32.partialorder %v710_v8, 3.999 }
 0x140   :  { %vm711_vm2 = vcmp.ge.f32.partialorder %v709_v5, 3.999  ;;  %v961_v17 = vsel %vm712_vm5, 1.0, %v1167_v20 }
 0x141   :  { %v960_v18 = vsel %vm711_vm2, 1.0, %v1167_v20  ;;  %v718_v10 = vmul.f32 3.999, %v961_v17 }
 0x142   :  { %v717_v21 = vmul.f32 3.999, %v960_v18  ;;  %v763_v43 = vsel %vm320_vm0, %v761_v45, %v960_v18 }
 0x143   :  { %v720_v22 = vsub.f32 %v710_v8, %v718_v10 }
 0x144   :  { %v719_v19 = vsub.f32 %v709_v5, %v717_v21 }
 0x145   :  { %v722_v24 = vadd.f32 %v720_v22, %v1422_v55 }
 0x146   :  { %v721_v23 = vadd.f32 %v719_v19, %v1424_v56 }
 0x147   :  { %vm724_vm7 = vcmp.ge.f32.partialorder %v722_v24, 3.999 }
 0x148   :  { %vm723_vm6 = vcmp.ge.f32.partialorder %v721_v23, 3.999  ;;  %v963_v26 = vsel %vm724_vm7, 1.0, %v1167_v20 }
 0x149   :  { %v962_v25 = vsel %vm723_vm6, 1.0, %v1167_v20  ;;  %v730_v28 = vmul.f32 3.999, %v963_v26 }
 0x14a   :  { %v729_v27 = vmul.f32 3.999, %v962_v25  ;;  %v765_v11 = vsel %vm323_vm3, %v763_v43, %v962_v25 }
 0x14b   :  { %v732_v36 = vsub.f32 %v722_v24, %v730_v28 }
 0x14c   :  { %v731_v32 = vsub.f32 %v721_v23, %v729_v27 }
 0x14d   :  { %v734_v41 = vadd.f32 %v732_v36, %v1422_v55 }
 0x14e   :  { %v733_v38 = vadd.f32 %v731_v32, %v1424_v56  ;;  %v764_v56 = vsel %vm320_vm0, %v762_v42, %v961_v17 }
 0x14f   :  { %vm736_vm10 = vcmp.ge.f32.partialorder %v734_v41, 3.999  ;;  %v766_v55 = vsel %vm323_vm3, %v764_v56, %v963_v26 }
 0x150   :  { %vm735_vm8 = vcmp.ge.f32.partialorder %v733_v38, 3.999  ;;  %v965_v48 = vsel %vm736_vm10, 1.0, %v1167_v20 }
 0x151   :  { %v964_v59 = vsel %vm735_vm8, 1.0, %v1167_v20  ;;  %v768_v14 = vsel %vm326_vm4, %v766_v55, %v965_v48 }
 0x152   :  { %v767_v63 = vsel %vm326_vm4, %v765_v11, %v964_v59 }
 0x153   :  { %v1085_v49 = vpack.i.bf16 %v768_v14, %v767_v63 }
 0x155   :  { %1086 = vxpose.xlu1.b32.end [2/2] (short) %v1085_v49, 128 }
 0x191   :  { %v1003_v60 = vpop.trf.xlu0 }
 0x192   :  { %v1007_v12 = vunpack.i.h.bf16 %v1003_v60  ;;  %v1004_v30 = vunpack.i.l.bf16 %v1003_v60 }
 0x194   :  { %424 = vst.msk [vmem:[%s1903_s1 + $0x80] sm:$0xff] %vm407_vm11, %v1007_v12  ;;  %408 = vst.msk [vmem:[%s1903_s1] sm:$0xff] %vm407_vm11, %v1004_v30 }
 0x195   :  { %v1008_v20 = vpop.trf.xlu0 }
 0x196   :  { %v1012_v61 = vunpack.i.h.bf16 %v1008_v20  ;;  %v1009_v15 = vunpack.i.l.bf16 %v1008_v20 }
 0x198   :  { %425 = vst.msk [vmem:[%s1903_s1 + $0x88] sm:$0xff] %vm407_vm11, %v1012_v61  ;;  %409 = vst.msk [vmem:[%s1903_s1 + $0x8] sm:$0xff] %vm407_vm11, %v1009_v15 }
 0x199   :  { %v1013_v31 = vpop.trf.xlu0 }
 0x19a   :  { %v1017_v51 = vunpack.i.h.bf16 %v1013_v31  ;;  %v1014_v34 = vunpack.i.l.bf16 %v1013_v31 }
 0x19c   :  { %426 = vst.msk [vmem:[%s1903_s1 + $0x90] sm:$0xff] %vm407_vm11, %v1017_v51  ;;  %410 = vst.msk [vmem:[%s1903_s1 + $0x10] sm:$0xff] %vm407_vm11, %v1014_v34 }
 0x19d   :  { %v1018_v46 = vpop.trf.xlu0 }
 0x19e   :  { %v1022_v53 = vunpack.i.h.bf16 %v1018_v46  ;;  %v1019_v54 = vunpack.i.l.bf16 %v1018_v46 }
 0x1a0   :  { %427 = vst.msk [vmem:[%s1903_s1 + $0x98] sm:$0xff] %vm407_vm11, %v1022_v53  ;;  %411 = vst.msk [vmem:[%s1903_s1 + $0x18] sm:$0xff] %vm407_vm11, %v1019_v54 }
 0x1a1   :  { %v1023_v35 = vpop.trf.xlu0 }
 0x1a2   :  { %v1027_v57 = vunpack.i.h.bf16 %v1023_v35  ;;  %v1024_v58 = vunpack.i.l.bf16 %v1023_v35 }
 0x1a4   :  { %428 = vst.msk [vmem:[%s1903_s1 + $0xa0] sm:$0xff] %vm407_vm11, %v1027_v57  ;;  %412 = vst.msk [vmem:[%s1903_s1 + $0x20] sm:$0xff] %vm407_vm11, %v1024_v58 }
 0x1a5   :  { %v1028_v47 = vpop.trf.xlu0 }
 0x1a6   :  { %v1032_v62 = vunpack.i.h.bf16 %v1028_v47  ;;  %v1029_v0 = vunpack.i.l.bf16 %v1028_v47 }
 0x1a8   :  { %429 = vst.msk [vmem:[%s1903_s1 + $0xa8] sm:$0xff] %vm407_vm11, %v1032_v62  ;;  %413 = vst.msk [vmem:[%s1903_s1 + $0x28] sm:$0xff] %vm407_vm11, %v1029_v0 }
 0x1a9   :  { %v1033_v1 = vpop.trf.xlu0 }
 0x1aa   :  { %v1037_v2 = vunpack.i.h.bf16 %v1033_v1  ;;  %v1034_v50 = vunpack.i.l.bf16 %v1033_v1 }
 0x1ac   :  { %430 = vst.msk [vmem:[%s1903_s1 + $0xb0] sm:$0xff] %vm407_vm11, %v1037_v2  ;;  %414 = vst.msk [vmem:[%s1903_s1 + $0x30] sm:$0xff] %vm407_vm11, %v1034_v50 }
 0x1ad   :  { %v1038_v4 = vpop.trf.xlu0 }
 0x1ae   :  { %v1042_v6 = vunpack.i.h.bf16 %v1038_v4  ;;  %v1039_v7 = vunpack.i.l.bf16 %v1038_v4 }
 0x1b0   :  { %431 = vst.msk [vmem:[%s1903_s1 + $0xb8] sm:$0xff] %vm407_vm11, %v1042_v6  ;;  %415 = vst.msk [vmem:[%s1903_s1 + $0x38] sm:$0xff] %vm407_vm11, %v1039_v7 }
 0x1b1   :  { %v1043_v52 = vpop.trf.xlu0 }
 0x1b2   :  { %v1047_v3 = vunpack.i.h.bf16 %v1043_v52  ;;  %v1044_v9 = vunpack.i.l.bf16 %v1043_v52 }
 0x1b4   :  { %432 = vst.msk [vmem:[%s1903_s1 + $0xc0] sm:$0xff] %vm407_vm11, %v1047_v3  ;;  %416 = vst.msk [vmem:[%s1903_s1 + $0x40] sm:$0xff] %vm407_vm11, %v1044_v9 }
 0x1b5   :  { %v1048_v13 = vpop.trf.xlu0 }
 0x1b6   :  { %v1052_v16 = vunpack.i.h.bf16 %v1048_v13  ;;  %v1049_v5 = vunpack.i.l.bf16 %v1048_v13 }
 0x1b8   :  { %433 = vst.msk [vmem:[%s1903_s1 + $0xc8] sm:$0xff] %vm407_vm11, %v1052_v16  ;;  %417 = vst.msk [vmem:[%s1903_s1 + $0x48] sm:$0xff] %vm407_vm11, %v1049_v5 }
 0x1b9   :  { %v1053_v8 = vpop.trf.xlu0 }
 0x1ba   :  { %v1057_v18 = vunpack.i.h.bf16 %v1053_v8  ;;  %v1054_v17 = vunpack.i.l.bf16 %v1053_v8 }
 0x1bc   :  { %434 = vst.msk [vmem:[%s1903_s1 + $0xd0] sm:$0xff] %vm407_vm11, %v1057_v18  ;;  %418 = vst.msk [vmem:[%s1903_s1 + $0x50] sm:$0xff] %vm407_vm11, %v1054_v17 }
 0x1bd   :  { %v1058_v21 = vpop.trf.xlu0 }
 0x1be   :  { %v1062_v10 = vunpack.i.h.bf16 %v1058_v21  ;;  %v1059_v19 = vunpack.i.l.bf16 %v1058_v21 }
 0x1c0   :  { %435 = vst.msk [vmem:[%s1903_s1 + $0xd8] sm:$0xff] %vm407_vm11, %v1062_v10  ;;  %419 = vst.msk [vmem:[%s1903_s1 + $0x58] sm:$0xff] %vm407_vm11, %v1059_v19 }
 0x1c1   :  { %v1063_v22 = vpop.trf.xlu0 }
 0x1c2   :  { %v1067_v23 = vunpack.i.h.bf16 %v1063_v22  ;;  %v1064_v24 = vunpack.i.l.bf16 %v1063_v22 }
 0x1c4   :  { %436 = vst.msk [vmem:[%s1903_s1 + $0xe0] sm:$0xff] %vm407_vm11, %v1067_v23  ;;  %420 = vst.msk [vmem:[%s1903_s1 + $0x60] sm:$0xff] %vm407_vm11, %v1064_v24 }
 0x1c5   :  { %v1068_v25 = vpop.trf.xlu0 }
 0x1c6   :  { %v1072_v26 = vunpack.i.h.bf16 %v1068_v25  ;;  %v1069_v27 = vunpack.i.l.bf16 %v1068_v25 }
 0x1c8   :  { %437 = vst.msk [vmem:[%s1903_s1 + $0xe8] sm:$0xff] %vm407_vm11, %v1072_v26  ;;  %421 = vst.msk [vmem:[%s1903_s1 + $0x68] sm:$0xff] %vm407_vm11, %v1069_v27 }
 0x1c9   :  { %v1073_v28 = vpop.trf.xlu0 }
 0x1ca   :  { %v1077_v29 = vunpack.i.h.bf16 %v1073_v28  ;;  %v1074_v32 = vunpack.i.l.bf16 %v1073_v28 }
 0x1cc   :  { %438 = vst.msk [vmem:[%s1903_s1 + $0xf0] sm:$0xff] %vm407_vm11, %v1077_v29  ;;  %422 = vst.msk [vmem:[%s1903_s1 + $0x70] sm:$0xff] %vm407_vm11, %v1074_v32 }
 0x1cd   :  { %v1078_v33 = vpop.trf.xlu0 }
 0x1ce   :  { %v1082_v36 = vunpack.i.h.bf16 %v1078_v33  ;;  %v1079_v37 = vunpack.i.l.bf16 %v1078_v33 }
 0x1d0   :  { %439 = vst.msk [vmem:[%s1903_s1 + $0xf8] sm:$0xff] %vm407_vm11, %v1082_v36  ;;  %423 = vst.msk [vmem:[%s1903_s1 + $0x78] sm:$0xff] %vm407_vm11, %v1079_v37 }
 0x1d1   :  { %v1087_v38 = vpop.trf.xlu1 }
 0x1d2   :  { %v1091_v39 = vunpack.i.h.bf16 %v1087_v38  ;;  %v1088_v40 = vunpack.i.l.bf16 %v1087_v38 }
 0x1d4   :  { %982 = vst.msk [vmem:[%s1903_s1 + $0x180] sm:$0xff] %vm407_vm11, %v1091_v39  ;;  %966 = vst.msk [vmem:[%s1903_s1 + $0x100] sm:$0xff] %vm407_vm11, %v1088_v40 }
 0x1d5   :  { %v1092_v41 = vpop.trf.xlu1 }
 0x1d6   :  { %v1096_v44 = vunpack.i.h.bf16 %v1092_v41  ;;  %v1093_v45 = vunpack.i.l.bf16 %v1092_v41 }
 0x1d8   :  { %983 = vst.msk [vmem:[%s1903_s1 + $0x188] sm:$0xff] %vm407_vm11, %v1096_v44  ;;  %967 = vst.msk [vmem:[%s1903_s1 + $0x108] sm:$0xff] %vm407_vm11, %v1093_v45 }
 0x1d9   :  { %v1097_v42 = vpop.trf.xlu1 }
 0x1da   :  { %v1101_v43 = vunpack.i.h.bf16 %v1097_v42  ;;  %v1098_v59 = vunpack.i.l.bf16 %v1097_v42 }
 0x1dc   :  { %984 = vst.msk [vmem:[%s1903_s1 + $0x190] sm:$0xff] %vm407_vm11, %v1101_v43  ;;  %968 = vst.msk [vmem:[%s1903_s1 + $0x110] sm:$0xff] %vm407_vm11, %v1098_v59 }
 0x1dd   :  { %v1102_v56 = vpop.trf.xlu1 }
 0x1de   :  { %v1106_v11 = vunpack.i.h.bf16 %v1102_v56  ;;  %v1103_v48 = vunpack.i.l.bf16 %v1102_v56 }
 0x1e0   :  { %985 = vst.msk [vmem:[%s1903_s1 + $0x198] sm:$0xff] %vm407_vm11, %v1106_v11  ;;  %969 = vst.msk [vmem:[%s1903_s1 + $0x118] sm:$0xff] %vm407_vm11, %v1103_v48 }
 0x1e1   :  { %v1107_v55 = vpop.trf.xlu1 }
 0x1e2   :  { %v1111_v63 = vunpack.i.h.bf16 %v1107_v55  ;;  %v1108_v14 = vunpack.i.l.bf16 %v1107_v55 }
 0x1e4   :  { %986 = vst.msk [vmem:[%s1903_s1 + $0x1a0] sm:$0xff] %vm407_vm11, %v1111_v63  ;;  %970 = vst.msk [vmem:[%s1903_s1 + $0x120] sm:$0xff] %vm407_vm11, %v1108_v14 }
 0x1e5   :  { %v1112_v49 = vpop.trf.xlu1 }
 0x1e6   :  { %v1116_v60 = vunpack.i.h.bf16 %v1112_v49  ;;  %v1113_v12 = vunpack.i.l.bf16 %v1112_v49 }
 0x1e8   :  { %987 = vst.msk [vmem:[%s1903_s1 + $0x1a8] sm:$0xff] %vm407_vm11, %v1116_v60  ;;  %971 = vst.msk [vmem:[%s1903_s1 + $0x128] sm:$0xff] %vm407_vm11, %v1113_v12 }
 0x1e9   :  { %v1117_v30 = vpop.trf.xlu1 }
 0x1ea   :  { %v1121_v20 = vunpack.i.h.bf16 %v1117_v30  ;;  %v1118_v61 = vunpack.i.l.bf16 %v1117_v30 }
 0x1ec   :  { %988 = vst.msk [vmem:[%s1903_s1 + $0x1b0] sm:$0xff] %vm407_vm11, %v1121_v20  ;;  %972 = vst.msk [vmem:[%s1903_s1 + $0x130] sm:$0xff] %vm407_vm11, %v1118_v61 }
 0x1ed   :  { %v1122_v15 = vpop.trf.xlu1 }
 0x1ee   :  { %v1126_v31 = vunpack.i.h.bf16 %v1122_v15  ;;  %v1123_v51 = vunpack.i.l.bf16 %v1122_v15 }
 0x1f0   :  { %989 = vst.msk [vmem:[%s1903_s1 + $0x1b8] sm:$0xff] %vm407_vm11, %v1126_v31  ;;  %973 = vst.msk [vmem:[%s1903_s1 + $0x138] sm:$0xff] %vm407_vm11, %v1123_v51 }
 0x1f1   :  { %v1127_v34 = vpop.trf.xlu1 }
 0x1f2   :  { %v1131_v46 = vunpack.i.h.bf16 %v1127_v34  ;;  %v1128_v53 = vunpack.i.l.bf16 %v1127_v34 }
 0x1f4   :  { %990 = vst.msk [vmem:[%s1903_s1 + $0x1c0] sm:$0xff] %vm407_vm11, %v1131_v46  ;;  %974 = vst.msk [vmem:[%s1903_s1 + $0x140] sm:$0xff] %vm407_vm11, %v1128_v53 }
 0x1f5   :  { %v1132_v54 = vpop.trf.xlu1 }
 0x1f6   :  { %v1136_v35 = vunpack.i.h.bf16 %v1132_v54  ;;  %v1133_v57 = vunpack.i.l.bf16 %v1132_v54 }
 0x1f8   :  { %991 = vst.msk [vmem:[%s1903_s1 + $0x1c8] sm:$0xff] %vm407_vm11, %v1136_v35  ;;  %975 = vst.msk [vmem:[%s1903_s1 + $0x148] sm:$0xff] %vm407_vm11, %v1133_v57 }
 0x1f9   :  { %v1137_v58 = vpop.trf.xlu1 }
 0x1fa   :  { %v1141_v47 = vunpack.i.h.bf16 %v1137_v58  ;;  %v1138_v62 = vunpack.i.l.bf16 %v1137_v58 }
 0x1fc   :  { %992 = vst.msk [vmem:[%s1903_s1 + $0x1d0] sm:$0xff] %vm407_vm11, %v1141_v47  ;;  %976 = vst.msk [vmem:[%s1903_s1 + $0x150] sm:$0xff] %vm407_vm11, %v1138_v62 }
 0x1fd   :  { %v1142_v0 = vpop.trf.xlu1 }
 0x1fe   :  { %v1146_v1 = vunpack.i.h.bf16 %v1142_v0  ;;  %v1143_v2 = vunpack.i.l.bf16 %v1142_v0 }
 0x200   :  { %993 = vst.msk [vmem:[%s1903_s1 + $0x1d8] sm:$0xff] %vm407_vm11, %v1146_v1  ;;  %977 = vst.msk [vmem:[%s1903_s1 + $0x158] sm:$0xff] %vm407_vm11, %v1143_v2 }
 0x201   :  { %v1147_v50 = vpop.trf.xlu1 }
 0x202   :  { %v1151_v4 = vunpack.i.h.bf16 %v1147_v50  ;;  %v1148_v6 = vunpack.i.l.bf16 %v1147_v50 }
 0x204   :  { %994 = vst.msk [vmem:[%s1903_s1 + $0x1e0] sm:$0xff] %vm407_vm11, %v1151_v4  ;;  %978 = vst.msk [vmem:[%s1903_s1 + $0x160] sm:$0xff] %vm407_vm11, %v1148_v6 }
 0x205   :  { %v1152_v7 = vpop.trf.xlu1 }
 0x206   :  { %v1156_v52 = vunpack.i.h.bf16 %v1152_v7  ;;  %v1153_v3 = vunpack.i.l.bf16 %v1152_v7 }
 0x208   :  { %995 = vst.msk [vmem:[%s1903_s1 + $0x1e8] sm:$0xff] %vm407_vm11, %v1156_v52  ;;  %979 = vst.msk [vmem:[%s1903_s1 + $0x168] sm:$0xff] %vm407_vm11, %v1153_v3 }
 0x209   :  { %v1157_v9 = vpop.trf.xlu1 }
 0x20a   :  { %v1161_v13 = vunpack.i.h.bf16 %v1157_v9  ;;  %v1158_v16 = vunpack.i.l.bf16 %v1157_v9 }
 0x20c   :  { %996 = vst.msk [vmem:[%s1903_s1 + $0x1f0] sm:$0xff] %vm407_vm11, %v1161_v13  ;;  %980 = vst.msk [vmem:[%s1903_s1 + $0x170] sm:$0xff] %vm407_vm11, %v1158_v16 }
 0x20d   :  { %v1162_v5 = vpop.trf.xlu1 }
 0x20e   :  { %v1166_v8 = vunpack.i.h.bf16 %v1162_v5  ;;  %v1163_v18 = vunpack.i.l.bf16 %v1162_v5 }
 0x210   :  { %997 = vst.msk [vmem:[%s1903_s1 + $0x1f8] sm:$0xff] %vm407_vm11, %v1166_v8  ;;  %981 = vst.msk [vmem:[%s1903_s1 + $0x178] sm:$0xff] %vm407_vm11, %v1163_v18 }

</bundles_post_ra>
